<compile_context>
chip_gen: v7x
topology: tpu7x:2x2x1
jax: 0.10.0
libtpu: 0.0.40
codegen_flags: <defaults>
</compile_context>

<pallas_src>
import functools
import math

import jax
import jax.numpy as jnp
from jax.experimental import pallas as pl
from jax.experimental.pallas import tpu as pltpu

D_MODEL = 32
N_HEAD = 4
DIM_FF = 64
NUM_LAYERS = 2
EPS = 1e-5
NEG_INF = -1e9


def _layernorm(x, w, b):
    mu = jnp.mean(x, axis=-1, keepdims=True)
    var = jnp.mean((x - mu) ** 2, axis=-1, keepdims=True)
    return (x - mu) * jax.lax.rsqrt(var + EPS) * w + b


def fused_encoder_kernel(x_ref, pos_ref, kpm_ref,
                         wqk_ref, bqk_ref, wv_ref, bv_ref,
                         wo_ref, bo_ref, w1_ref, b1_ref, w2_ref, b2_ref,
                         n1w_ref, n1b_ref, n2w_ref, n2b_ref,
                         fnw_ref, fnb_ref,
                         out_ref, *, with_final_norm):
    bb, S, d = x_ref.shape          # (batch_block, seq, d_model)
    L = wqk_ref.shape[0]            # number of encoder layers (static)
    h = N_HEAD
    dh = d // h
    scale = 1.0 / math.sqrt(dh)
    rows = bb * S

    # Flatten batch_block*seq rows for all linear layers (fills MXU M dimension).
    x = x_ref[...].reshape(rows, d)
    p = pos_ref[...].reshape(rows, d)

    for layer in range(L):          # static unrolled: whole layer stack in one kernel
        qk_in = x + p
        # Fused q+k projection (Wq||Wk pre-concatenated in the wrapper); value uses src.
        qk = jnp.dot(qk_in, wqk_ref[layer],
                     preferred_element_type=jnp.float32) + bqk_ref[layer]      # (R, 2D)
        v = jnp.dot(x, wv_ref[layer],
                    preferred_element_type=jnp.float32) + bv_ref[layer]        # (R, D)

        q3 = qk[:, :d].reshape(bb, S, h, dh)
        k3 = qk[:, d:].reshape(bb, S, h, dh)
        v3 = v.reshape(bb, S, h, dh)

        per_batch = []
        for bi in range(bb):        # static; attention is per batch element
            s_hst = jnp.einsum('shd,thd->hst', q3[bi], k3[bi],
                               preferred_element_type=jnp.float32) * scale     # (h,S,S)
            s_hst = s_hst + kpm_ref[bi]                 # (1,S) additive key-pad mask
            s_hst = s_hst - jnp.max(s_hst, axis=-1, keepdims=True)
            e = jnp.exp(s_hst)
            a = e * pl.reciprocal(jnp.sum(e, axis=-1, keepdims=True), approx=True)
            o = jnp.einsum('hst,thd->shd', a, v3[bi],
                           preferred_element_type=jnp.float32)                 # (S,h,dh)
            per_batch.append(o.reshape(S, d))
        attn = per_batch[0] if bb == 1 else jnp.concatenate(per_batch, axis=0)  # (R, D)

        attn = jnp.dot(attn, wo_ref[layer],
                       preferred_element_type=jnp.float32) + bo_ref[layer]
        x1 = _layernorm(x + attn, n1w_ref[layer], n1b_ref[layer])

        ff = jnp.dot(x1, w1_ref[layer],
                     preferred_element_type=jnp.float32) + b1_ref[layer]
        ff = jnp.maximum(ff, 0.0)                       # ReLU
        ff = jnp.dot(ff, w2_ref[layer],
                     preferred_element_type=jnp.float32) + b2_ref[layer]
        x = _layernorm(x1 + ff, n2w_ref[layer], n2b_ref[layer])

    if with_final_norm:                                 # fused optional final LayerNorm
        x = _layernorm(x, fnw_ref[...], fnb_ref[...])

    out_ref[...] = x.reshape(bb, S, d).astype(out_ref.dtype)


def _fused_encoder_call(B, S, L, with_final_norm, batch_block=1):
    assert B % batch_block == 0
    d, f, bb = D_MODEL, DIM_FF, batch_block

    data_spec = pl.BlockSpec((bb, S, d), lambda b: (b, 0, 0))
    kpm_spec = pl.BlockSpec((bb, 1, S), lambda b: (b, 0, 0))

    def wspec(shape):
        return pl.BlockSpec(shape, lambda b, _z=(0,) * len(shape): _z)

    weight_shapes = [
        (L, d, 2 * d), (L, 1, 2 * d),   # Wq||Wk (pre-transposed), bias
        (L, d, d), (L, 1, d),           # Wv, bias
        (L, d, d), (L, 1, d),           # out_proj, bias
        (L, d, f), (L, 1, f),           # linear1, bias
        (L, f, d), (L, 1, d),           # linear2, bias
        (L, 1, d), (L, 1, d),           # norm1 w, b
        (L, 1, d), (L, 1, d),           # norm2 w, b
        (1, d), (1, d),                 # final norm w, b (ignored if not with_final_norm)
    ]
    in_specs = [data_spec, data_spec, kpm_spec] + [wspec(s) for s in weight_shapes]

    kernel = functools.partial(fused_encoder_kernel, with_final_norm=with_final_norm)
    return pl.pallas_call(
        kernel,
        out_shape=jax.ShapeDtypeStruct((B, S, d), jnp.float32),
        grid_spec=pltpu.PrefetchScalarGridSpec(
            num_scalar_prefetch=0,
            grid=(B // bb,),
            in_specs=in_specs,
            out_specs=pl.BlockSpec((bb, S, d), lambda b: (b, 0, 0)),
        ),
        compiler_params=pltpu.CompilerParams(dimension_semantics=("parallel",)),
    )


def init_params(key, num_layers=NUM_LAYERS, with_final_norm=True):
    ks = jax.random.split(key, 6)
    scale = 0.02
    d, f = D_MODEL, DIM_FF
    ipw = jax.random.normal(ks[0], (3 * d, d), jnp.float32) * scale   # PyTorch in_proj_weight
    ipb = jax.random.normal(ks[1], (3 * d,), jnp.float32) * scale
    opw = jax.random.normal(ks[2], (d, d), jnp.float32) * scale
    opb = jnp.zeros((d,), jnp.float32)
    l1w = jax.random.normal(ks[3], (f, d), jnp.float32) * scale
    l1b = jax.random.normal(ks[4], (f,), jnp.float32) * scale
    l2w = jax.random.normal(ks[5], (d, f), jnp.float32) * scale
    l2b = jnp.zeros((d,), jnp.float32)
    nw = jnp.ones((d,), jnp.float32)
    nb = jnp.zeros((d,), jnp.float32)

    ipw_t = ipw.T                     # (d, 3d): pre-transposed so kernel does x @ W
    ipb_r = ipb.reshape(1, -1)
    layer = dict(
        wqk=ipw_t[:, :2 * d], bqk=ipb_r[:, :2 * d],
        wv=ipw_t[:, 2 * d:], bv=ipb_r[:, 2 * d:],
        wo=opw.T, bo=opb.reshape(1, -1),
        w1=l1w.T, b1=l1b.reshape(1, -1),
        w2=l2w.T, b2=l2b.reshape(1, -1),
        n1w=nw.reshape(1, -1), n1b=nb.reshape(1, -1),
        n2w=nw.reshape(1, -1), n2b=nb.reshape(1, -1),
    )
    names = ("wqk", "bqk", "wv", "bv", "wo", "bo", "w1", "b1", "w2", "b2",
             "n1w", "n1b", "n2w", "n2b")
    # _get_clones uses deepcopy -> identical per-layer weights at init; stacked layout
    # along L supports distinct per-layer weights as well.
    stacked = tuple(jnp.stack([layer[n]] * num_layers, axis=0) for n in names)
    norm = (nw.reshape(1, -1), nb.reshape(1, -1)) if with_final_norm else None
    return {"stacked": stacked, "num_layers": num_layers, "norm": norm}


def transformer_encoder(src, params, mask=None, src_key_padding_mask=None, pos=None,
                        batch_block=1):
    """src/pos: (S, B, D) seq-first (PyTorch batch_first=False). Returns (S, B, D)."""
    S, B, D = src.shape
    assert D == D_MODEL
    # TODO(synk): src_mask (attn_mask) not wired into the kernel; only None supported.
    assert mask is None, "src_mask (attn_mask) is not supported"

    # Layout plumbing kept outside the kernel (tiny tensors; keeps blocks (8,128)-legal).
    x = jnp.transpose(src, (1, 0, 2))                                  # (B, S, D)
    pos_b = jnp.zeros_like(x) if pos is None else jnp.transpose(pos, (1, 0, 2))
    if src_key_padding_mask is None:
        kpm = jnp.zeros((B, 1, S), jnp.float32)
    else:
        kpm = jnp.where(src_key_padding_mask, NEG_INF, 0.0).astype(jnp.float32)
        kpm = kpm.reshape(B, 1, S)

    with_final_norm = params["norm"] is not None
    if with_final_norm:
        fnw, fnb = params["norm"]
    else:
        fnw = jnp.ones((1, D_MODEL), jnp.float32)
        fnb = jnp.zeros((1, D_MODEL), jnp.float32)

    call = _fused_encoder_call(B, S, params["num_layers"], with_final_norm,
                               batch_block=batch_block)
    out = call(x, pos_b, kpm, *params["stacked"], fnw, fnb)
    return jnp.transpose(out, (1, 0, 2))                               # back to (S, B, D)


if __name__ == "__main__":
    key = jax.random.PRNGKey(0)
    k_src, k_pos, k_par = jax.random.split(key, 3)
    S, B = 8, 2
    src = jax.random.normal(k_src, (S, B, D_MODEL), jnp.float32)
    pos = jax.random.normal(k_pos, (S, B, D_MODEL), jnp.float32)
    params = init_params(k_par, num_layers=NUM_LAYERS, with_final_norm=True)

    out = transformer_encoder(src, params, pos=pos)
    out = jax.block_until_ready(out)
    assert out.shape == (S, B, D_MODEL)
    assert bool(jnp.all(jnp.isfinite(out)))

    # Exercise the key-padding-mask path (last 2 keys of batch 1 padded).
    kpm_bool = jnp.zeros((B, S), jnp.bool_).at[1, 6:].set(True)
    out_m = transformer_encoder(src, params, src_key_padding_mask=kpm_bool, pos=pos)
    out_m = jax.block_until_ready(out_m)
    assert out_m.shape == (S, B, D_MODEL)
    assert bool(jnp.all(jnp.isfinite(out_m)))

    print("KERNEL_OK")
</pallas_src>

<mosaic_0001>
module attributes {stable_mosaic.version = 11 : i64} {
  func.func @fused_encoder_kernel(%arg0: i32, %arg1: memref<1x8x32xf32, #tpu.memory_space<vmem>>, %arg2: memref<1x8x32xf32, #tpu.memory_space<vmem>>, %arg3: memref<1x1x8xf32, #tpu.memory_space<vmem>>, %arg4: memref<2x32x64xf32, #tpu.memory_space<vmem>>, %arg5: memref<2x1x64xf32, #tpu.memory_space<vmem>>, %arg6: memref<2x32x32xf32, #tpu.memory_space<vmem>>, %arg7: memref<2x1x32xf32, #tpu.memory_space<vmem>>, %arg8: memref<2x32x32xf32, #tpu.memory_space<vmem>>, %arg9: memref<2x1x32xf32, #tpu.memory_space<vmem>>, %arg10: memref<2x32x64xf32, #tpu.memory_space<vmem>>, %arg11: memref<2x1x64xf32, #tpu.memory_space<vmem>>, %arg12: memref<2x64x32xf32, #tpu.memory_space<vmem>>, %arg13: memref<2x1x32xf32, #tpu.memory_space<vmem>>, %arg14: memref<2x1x32xf32, #tpu.memory_space<vmem>>, %arg15: memref<2x1x32xf32, #tpu.memory_space<vmem>>, %arg16: memref<2x1x32xf32, #tpu.memory_space<vmem>>, %arg17: memref<2x1x32xf32, #tpu.memory_space<vmem>>, %arg18: memref<1x32xf32, #tpu.memory_space<vmem>>, %arg19: memref<1x32xf32, #tpu.memory_space<vmem>>, %arg20: memref<1x8x32xf32, #tpu.memory_space<vmem>>) attributes {dimension_semantics = [#tpu.dimension_semantics<parallel>], iteration_bounds = array<i64: 2>, scalar_prefetch = 0 : i64, scratch_operands = 0 : i64, tpu.core_type = #tpu.core_type<tc>, window_params = [{transform_indices = @transform_0, window_bounds = array<i64: 1, 8, 32>}, {transform_indices = @transform_1, window_bounds = array<i64: 1, 8, 32>}, {transform_indices = @transform_2, window_bounds = array<i64: 1, 1, 8>}, {pipeline_mode = #tpu.pipeline_mode<synchronous>, transform_indices = @transform_3, window_bounds = array<i64: 2, 32, 64>}, {pipeline_mode = #tpu.pipeline_mode<synchronous>, transform_indices = @transform_4, window_bounds = array<i64: 2, 1, 64>}, {pipeline_mode = #tpu.pipeline_mode<synchronous>, transform_indices = @transform_5, window_bounds = array<i64: 2, 32, 32>}, {pipeline_mode = #tpu.pipeline_mode<synchronous>, transform_indices = @transform_6, window_bounds = array<i64: 2, 1, 32>}, {pipeline_mode = #tpu.pipeline_mode<synchronous>, transform_indices = @transform_7, window_bounds = array<i64: 2, 32, 32>}, {pipeline_mode = #tpu.pipeline_mode<synchronous>, transform_indices = @transform_8, window_bounds = array<i64: 2, 1, 32>}, {pipeline_mode = #tpu.pipeline_mode<synchronous>, transform_indices = @transform_9, window_bounds = array<i64: 2, 32, 64>}, {pipeline_mode = #tpu.pipeline_mode<synchronous>, transform_indices = @transform_10, window_bounds = array<i64: 2, 1, 64>}, {pipeline_mode = #tpu.pipeline_mode<synchronous>, transform_indices = @transform_11, window_bounds = array<i64: 2, 64, 32>}, {pipeline_mode = #tpu.pipeline_mode<synchronous>, transform_indices = @transform_12, window_bounds = array<i64: 2, 1, 32>}, {pipeline_mode = #tpu.pipeline_mode<synchronous>, transform_indices = @transform_13, window_bounds = array<i64: 2, 1, 32>}, {pipeline_mode = #tpu.pipeline_mode<synchronous>, transform_indices = @transform_14, window_bounds = array<i64: 2, 1, 32>}, {pipeline_mode = #tpu.pipeline_mode<synchronous>, transform_indices = @transform_15, window_bounds = array<i64: 2, 1, 32>}, {pipeline_mode = #tpu.pipeline_mode<synchronous>, transform_indices = @transform_16, window_bounds = array<i64: 2, 1, 32>}, {pipeline_mode = #tpu.pipeline_mode<synchronous>, transform_indices = @transform_17, window_bounds = array<i64: 1, 32>}, {pipeline_mode = #tpu.pipeline_mode<synchronous>, transform_indices = @transform_18, window_bounds = array<i64: 1, 32>}, {transform_indices = @transform_19, window_bounds = array<i64: 1, 8, 32>}]} {
    %c0 = arith.constant 0 : index
    %c0_0 = arith.constant 0 : index
    %c0_1 = arith.constant 0 : index
    %0 = vector.load %arg1[%c0, %c0_0, %c0_1] : memref<1x8x32xf32, #tpu.memory_space<vmem>>, vector<1x8x32xf32>
    %1 = vector.shape_cast %0 : vector<1x8x32xf32> to vector<8x32xf32>
    %c0_2 = arith.constant 0 : index
    %c0_3 = arith.constant 0 : index
    %c0_4 = arith.constant 0 : index
    %2 = vector.load %arg2[%c0_2, %c0_3, %c0_4] : memref<1x8x32xf32, #tpu.memory_space<vmem>>, vector<1x8x32xf32>
    %3 = vector.shape_cast %2 : vector<1x8x32xf32> to vector<8x32xf32>
    %4 = arith.addf %1, %3 : vector<8x32xf32>
    %c0_5 = arith.constant 0 : index
    %c0_6 = arith.constant 0 : index
    %c0_7 = arith.constant 0 : index
    %5 = vector.load %arg4[%c0_5, %c0_6, %c0_7] : memref<2x32x64xf32, #tpu.memory_space<vmem>>, vector<1x32x64xf32>
    %6 = vector.shape_cast %5 : vector<1x32x64xf32> to vector<32x64xf32>
    %cst = arith.constant dense<0.000000e+00> : vector<8x64xf32>
    %7 = tpu.matmul %4, %6, %cst {dimension_numbers = #tpu.dot_dimension_numbers<[1], [0], [0], [1], [0, 0, 1, 1], [], []>} : vector<8x32xf32>, vector<32x64xf32>, vector<8x64xf32> -> vector<8x64xf32>
    %c0_8 = arith.constant 0 : index
    %c0_9 = arith.constant 0 : index
    %c0_10 = arith.constant 0 : index
    %8 = vector.load %arg5[%c0_8, %c0_9, %c0_10] : memref<2x1x64xf32, #tpu.memory_space<vmem>>, vector<1x1x64xf32>
    %9 = vector.shape_cast %8 : vector<1x1x64xf32> to vector<1x64xf32>
    %10 = vector.broadcast %9 : vector<1x64xf32> to vector<8x64xf32>
    %11 = arith.addf %7, %10 : vector<8x64xf32>
    %c0_11 = arith.constant 0 : index
    %c0_12 = arith.constant 0 : index
    %c0_13 = arith.constant 0 : index
    %12 = vector.load %arg6[%c0_11, %c0_12, %c0_13] : memref<2x32x32xf32, #tpu.memory_space<vmem>>, vector<1x32x32xf32>
    %13 = vector.shape_cast %12 : vector<1x32x32xf32> to vector<32x32xf32>
    %cst_14 = arith.constant dense<0.000000e+00> : vector<8x32xf32>
    %14 = tpu.matmul %1, %13, %cst_14 {dimension_numbers = #tpu.dot_dimension_numbers<[1], [0], [0], [1], [0, 0, 1, 1], [], []>} : vector<8x32xf32>, vector<32x32xf32>, vector<8x32xf32> -> vector<8x32xf32>
    %c0_15 = arith.constant 0 : index
    %c0_16 = arith.constant 0 : index
    %c0_17 = arith.constant 0 : index
    %15 = vector.load %arg7[%c0_15, %c0_16, %c0_17] : memref<2x1x32xf32, #tpu.memory_space<vmem>>, vector<1x1x32xf32>
    %16 = vector.shape_cast %15 : vector<1x1x32xf32> to vector<1x32xf32>
    %17 = vector.broadcast %16 : vector<1x32xf32> to vector<8x32xf32>
    %18 = arith.addf %14, %17 : vector<8x32xf32>
    %19 = vector.extract_strided_slice %11 {offsets = [0, 0], sizes = [8, 32], strides = [1, 1]} : vector<8x64xf32> to vector<8x32xf32>
    %20 = vector.shape_cast %19 : vector<8x32xf32> to vector<1x8x4x8xf32>
    %21 = vector.extract_strided_slice %11 {offsets = [0, 32], sizes = [8, 32], strides = [1, 1]} : vector<8x64xf32> to vector<8x32xf32>
    %22 = vector.shape_cast %21 : vector<8x32xf32> to vector<1x8x4x8xf32>
    %23 = vector.shape_cast %18 : vector<8x32xf32> to vector<1x8x4x8xf32>
    %24 = vector.shape_cast %20 : vector<1x8x4x8xf32> to vector<8x4x8xf32>
    %25 = vector.shape_cast %22 : vector<1x8x4x8xf32> to vector<8x4x8xf32>
    "tpu.trace_start"() <{level = 10 : i32, message = "shd,thd->hst"}> : () -> ()
    %cst_18 = arith.constant dense<0.000000e+00> : vector<4x8x8xf32>
    %26 = tpu.matmul %24, %25, %cst_18 {dimension_numbers = #tpu.dot_dimension_numbers<[2], [2], [0], [0], [0, 1, 0, 0, 1, 0], [1], [1]>} : vector<8x4x8xf32>, vector<8x4x8xf32>, vector<4x8x8xf32> -> vector<4x8x8xf32>
    "tpu.trace_stop"() : () -> ()
    %cst_19 = arith.constant 0.353553385 : f32
    %27 = vector.broadcast %cst_19 : f32 to vector<4x8x8xf32>
    %28 = arith.mulf %26, %27 : vector<4x8x8xf32>
    %c0_20 = arith.constant 0 : index
    %c0_21 = arith.constant 0 : index
    %c0_22 = arith.constant 0 : index
    %29 = vector.load %arg3[%c0_20, %c0_21, %c0_22] : memref<1x1x8xf32, #tpu.memory_space<vmem>>, vector<1x1x8xf32>
    %30 = vector.shape_cast %29 : vector<1x1x8xf32> to vector<1x8xf32>
    %31 = vector.shape_cast %30 : vector<1x8xf32> to vector<1x1x8xf32>
    %32 = vector.broadcast %31 : vector<1x1x8xf32> to vector<4x8x8xf32>
    %33 = arith.addf %28, %32 : vector<4x8x8xf32>
    %cst_23 = arith.constant dense<0xFF800000> : vector<4x8xf32>
    %34 = vector.multi_reduction <maximumf>, %33, %cst_23 [2] : vector<4x8x8xf32> to vector<4x8xf32>
    %35 = vector.shape_cast %34 : vector<4x8xf32> to vector<4x8x1xf32>
    %36 = vector.broadcast %35 : vector<4x8x1xf32> to vector<4x8x8xf32>
    %37 = arith.subf %33, %36 : vector<4x8x8xf32>
    %38 = math.exp %37 : vector<4x8x8xf32>
    %cst_24 = arith.constant dense<0.000000e+00> : vector<4x8xf32>
    %39 = vector.multi_reduction <add>, %38, %cst_24 [2] : vector<4x8x8xf32> to vector<4x8xf32>
    %40 = vector.shape_cast %39 : vector<4x8xf32> to vector<4x8x1xf32>
    %41 = tpu.reciprocal %40 {approx = true} : vector<4x8x1xf32> -> vector<4x8x1xf32>
    %42 = vector.broadcast %41 : vector<4x8x1xf32> to vector<4x8x8xf32>
    %43 = arith.mulf %38, %42 : vector<4x8x8xf32>
    %44 = vector.shape_cast %23 : vector<1x8x4x8xf32> to vector<8x4x8xf32>
    "tpu.trace_start"() <{level = 10 : i32, message = "hst,thd->shd"}> : () -> ()
    %cst_25 = arith.constant dense<0.000000e+00> : vector<4x8x8xf32>
    %45 = tpu.matmul %44, %43, %cst_25 {dimension_numbers = #tpu.dot_dimension_numbers<[0], [2], [2], [1], [0, 1, 0, 2, 1, 1], [1], [0]>} : vector<8x4x8xf32>, vector<4x8x8xf32>, vector<4x8x8xf32> -> vector<4x8x8xf32>
    %46 = tpu.transpose %45, [2, 0, 1] : vector<4x8x8xf32> -> vector<8x4x8xf32>
    "tpu.trace_stop"() : () -> ()
    %47 = vector.shape_cast %46 : vector<8x4x8xf32> to vector<8x32xf32>
    %c0_26 = arith.constant 0 : index
    %c0_27 = arith.constant 0 : index
    %c0_28 = arith.constant 0 : index
    %48 = vector.load %arg8[%c0_26, %c0_27, %c0_28] : memref<2x32x32xf32, #tpu.memory_space<vmem>>, vector<1x32x32xf32>
    %49 = vector.shape_cast %48 : vector<1x32x32xf32> to vector<32x32xf32>
    %cst_29 = arith.constant dense<0.000000e+00> : vector<8x32xf32>
    %50 = tpu.matmul %47, %49, %cst_29 {dimension_numbers = #tpu.dot_dimension_numbers<[1], [0], [0], [1], [0, 0, 1, 1], [], []>} : vector<8x32xf32>, vector<32x32xf32>, vector<8x32xf32> -> vector<8x32xf32>
    %c0_30 = arith.constant 0 : index
    %c0_31 = arith.constant 0 : index
    %c0_32 = arith.constant 0 : index
    %51 = vector.load %arg9[%c0_30, %c0_31, %c0_32] : memref<2x1x32xf32, #tpu.memory_space<vmem>>, vector<1x1x32xf32>
    %52 = vector.shape_cast %51 : vector<1x1x32xf32> to vector<1x32xf32>
    %53 = vector.broadcast %52 : vector<1x32xf32> to vector<8x32xf32>
    %54 = arith.addf %50, %53 : vector<8x32xf32>
    %55 = arith.addf %1, %54 : vector<8x32xf32>
    %c0_33 = arith.constant 0 : index
    %c0_34 = arith.constant 0 : index
    %c0_35 = arith.constant 0 : index
    %56 = vector.load %arg14[%c0_33, %c0_34, %c0_35] : memref<2x1x32xf32, #tpu.memory_space<vmem>>, vector<1x1x32xf32>
    %57 = vector.shape_cast %56 : vector<1x1x32xf32> to vector<1x32xf32>
    %c0_36 = arith.constant 0 : index
    %c0_37 = arith.constant 0 : index
    %c0_38 = arith.constant 0 : index
    %58 = vector.load %arg15[%c0_36, %c0_37, %c0_38] : memref<2x1x32xf32, #tpu.memory_space<vmem>>, vector<1x1x32xf32>
    %59 = vector.shape_cast %58 : vector<1x1x32xf32> to vector<1x32xf32>
    %cst_39 = arith.constant dense<0.000000e+00> : vector<8xf32>
    %60 = vector.multi_reduction <add>, %55, %cst_39 [1] : vector<8x32xf32> to vector<8xf32>
    %61 = vector.shape_cast %60 : vector<8xf32> to vector<8x1xf32>
    %cst_40 = arith.constant 3.200000e+01 : f32
    %62 = vector.broadcast %cst_40 : f32 to vector<8x1xf32>
    %63 = arith.divf %61, %62 : vector<8x1xf32>
    %64 = vector.broadcast %63 : vector<8x1xf32> to vector<8x32xf32>
    %65 = arith.subf %55, %64 : vector<8x32xf32>
    %66 = arith.mulf %65, %65 : vector<8x32xf32>
    %cst_41 = arith.constant dense<0.000000e+00> : vector<8xf32>
    %67 = vector.multi_reduction <add>, %66, %cst_41 [1] : vector<8x32xf32> to vector<8xf32>
    %68 = vector.shape_cast %67 : vector<8xf32> to vector<8x1xf32>
    %cst_42 = arith.constant 3.200000e+01 : f32
    %69 = vector.broadcast %cst_42 : f32 to vector<8x1xf32>
    %70 = arith.divf %68, %69 : vector<8x1xf32>
    %71 = vector.broadcast %63 : vector<8x1xf32> to vector<8x32xf32>
    %72 = arith.subf %55, %71 : vector<8x32xf32>
    %cst_43 = arith.constant 9.99999974E-6 : f32
    %73 = vector.broadcast %cst_43 : f32 to vector<8x1xf32>
    %74 = arith.addf %70, %73 : vector<8x1xf32>
    %75 = math.rsqrt %74 : vector<8x1xf32>
    %76 = vector.broadcast %75 : vector<8x1xf32> to vector<8x32xf32>
    %77 = arith.mulf %72, %76 : vector<8x32xf32>
    %78 = vector.broadcast %57 : vector<1x32xf32> to vector<8x32xf32>
    %79 = arith.mulf %77, %78 : vector<8x32xf32>
    %80 = vector.broadcast %59 : vector<1x32xf32> to vector<8x32xf32>
    %81 = arith.addf %79, %80 : vector<8x32xf32>
    %c0_44 = arith.constant 0 : index
    %c0_45 = arith.constant 0 : index
    %c0_46 = arith.constant 0 : index
    %82 = vector.load %arg10[%c0_44, %c0_45, %c0_46] : memref<2x32x64xf32, #tpu.memory_space<vmem>>, vector<1x32x64xf32>
    %83 = vector.shape_cast %82 : vector<1x32x64xf32> to vector<32x64xf32>
    %cst_47 = arith.constant dense<0.000000e+00> : vector<8x64xf32>
    %84 = tpu.matmul %81, %83, %cst_47 {dimension_numbers = #tpu.dot_dimension_numbers<[1], [0], [0], [1], [0, 0, 1, 1], [], []>} : vector<8x32xf32>, vector<32x64xf32>, vector<8x64xf32> -> vector<8x64xf32>
    %c0_48 = arith.constant 0 : index
    %c0_49 = arith.constant 0 : index
    %c0_50 = arith.constant 0 : index
    %85 = vector.load %arg11[%c0_48, %c0_49, %c0_50] : memref<2x1x64xf32, #tpu.memory_space<vmem>>, vector<1x1x64xf32>
    %86 = vector.shape_cast %85 : vector<1x1x64xf32> to vector<1x64xf32>
    %87 = vector.broadcast %86 : vector<1x64xf32> to vector<8x64xf32>
    %88 = arith.addf %84, %87 : vector<8x64xf32>
    %cst_51 = arith.constant 0.000000e+00 : f32
    %89 = vector.broadcast %cst_51 : f32 to vector<8x64xf32>
    %90 = arith.maximumf %88, %89 : vector<8x64xf32>
    %c0_52 = arith.constant 0 : index
    %c0_53 = arith.constant 0 : index
    %c0_54 = arith.constant 0 : index
    %91 = vector.load %arg12[%c0_52, %c0_53, %c0_54] : memref<2x64x32xf32, #tpu.memory_space<vmem>>, vector<1x64x32xf32>
    %92 = vector.shape_cast %91 : vector<1x64x32xf32> to vector<64x32xf32>
    %cst_55 = arith.constant dense<0.000000e+00> : vector<8x32xf32>
    %93 = tpu.matmul %90, %92, %cst_55 {dimension_numbers = #tpu.dot_dimension_numbers<[1], [0], [0], [1], [0, 0, 1, 1], [], []>} : vector<8x64xf32>, vector<64x32xf32>, vector<8x32xf32> -> vector<8x32xf32>
    %c0_56 = arith.constant 0 : index
    %c0_57 = arith.constant 0 : index
    %c0_58 = arith.constant 0 : index
    %94 = vector.load %arg13[%c0_56, %c0_57, %c0_58] : memref<2x1x32xf32, #tpu.memory_space<vmem>>, vector<1x1x32xf32>
    %95 = vector.shape_cast %94 : vector<1x1x32xf32> to vector<1x32xf32>
    %96 = vector.broadcast %95 : vector<1x32xf32> to vector<8x32xf32>
    %97 = arith.addf %93, %96 : vector<8x32xf32>
    %98 = arith.addf %81, %97 : vector<8x32xf32>
    %c0_59 = arith.constant 0 : index
    %c0_60 = arith.constant 0 : index
    %c0_61 = arith.constant 0 : index
    %99 = vector.load %arg16[%c0_59, %c0_60, %c0_61] : memref<2x1x32xf32, #tpu.memory_space<vmem>>, vector<1x1x32xf32>
    %100 = vector.shape_cast %99 : vector<1x1x32xf32> to vector<1x32xf32>
    %c0_62 = arith.constant 0 : index
    %c0_63 = arith.constant 0 : index
    %c0_64 = arith.constant 0 : index
    %101 = vector.load %arg17[%c0_62, %c0_63, %c0_64] : memref<2x1x32xf32, #tpu.memory_space<vmem>>, vector<1x1x32xf32>
    %102 = vector.shape_cast %101 : vector<1x1x32xf32> to vector<1x32xf32>
    %cst_65 = arith.constant dense<0.000000e+00> : vector<8xf32>
    %103 = vector.multi_reduction <add>, %98, %cst_65 [1] : vector<8x32xf32> to vector<8xf32>
    %104 = vector.shape_cast %103 : vector<8xf32> to vector<8x1xf32>
    %cst_66 = arith.constant 3.200000e+01 : f32
    %105 = vector.broadcast %cst_66 : f32 to vector<8x1xf32>
    %106 = arith.divf %104, %105 : vector<8x1xf32>
    %107 = vector.broadcast %106 : vector<8x1xf32> to vector<8x32xf32>
    %108 = arith.subf %98, %107 : vector<8x32xf32>
    %109 = arith.mulf %108, %108 : vector<8x32xf32>
    %cst_67 = arith.constant dense<0.000000e+00> : vector<8xf32>
    %110 = vector.multi_reduction <add>, %109, %cst_67 [1] : vector<8x32xf32> to vector<8xf32>
    %111 = vector.shape_cast %110 : vector<8xf32> to vector<8x1xf32>
    %cst_68 = arith.constant 3.200000e+01 : f32
    %112 = vector.broadcast %cst_68 : f32 to vector<8x1xf32>
    %113 = arith.divf %111, %112 : vector<8x1xf32>
    %114 = vector.broadcast %106 : vector<8x1xf32> to vector<8x32xf32>
    %115 = arith.subf %98, %114 : vector<8x32xf32>
    %cst_69 = arith.constant 9.99999974E-6 : f32
    %116 = vector.broadcast %cst_69 : f32 to vector<8x1xf32>
    %117 = arith.addf %113, %116 : vector<8x1xf32>
    %118 = math.rsqrt %117 : vector<8x1xf32>
    %119 = vector.broadcast %118 : vector<8x1xf32> to vector<8x32xf32>
    %120 = arith.mulf %115, %119 : vector<8x32xf32>
    %121 = vector.broadcast %100 : vector<1x32xf32> to vector<8x32xf32>
    %122 = arith.mulf %120, %121 : vector<8x32xf32>
    %123 = vector.broadcast %102 : vector<1x32xf32> to vector<8x32xf32>
    %124 = arith.addf %122, %123 : vector<8x32xf32>
    %125 = arith.addf %124, %3 : vector<8x32xf32>
    %c1 = arith.constant 1 : index
    %c0_70 = arith.constant 0 : index
    %c0_71 = arith.constant 0 : index
    %126 = vector.load %arg4[%c1, %c0_70, %c0_71] : memref<2x32x64xf32, #tpu.memory_space<vmem>>, vector<1x32x64xf32>
    %127 = vector.shape_cast %126 : vector<1x32x64xf32> to vector<32x64xf32>
    %cst_72 = arith.constant dense<0.000000e+00> : vector<8x64xf32>
    %128 = tpu.matmul %125, %127, %cst_72 {dimension_numbers = #tpu.dot_dimension_numbers<[1], [0], [0], [1], [0, 0, 1, 1], [], []>} : vector<8x32xf32>, vector<32x64xf32>, vector<8x64xf32> -> vector<8x64xf32>
    %c1_73 = arith.constant 1 : index
    %c0_74 = arith.constant 0 : index
    %c0_75 = arith.constant 0 : index
    %129 = vector.load %arg5[%c1_73, %c0_74, %c0_75] : memref<2x1x64xf32, #tpu.memory_space<vmem>>, vector<1x1x64xf32>
    %130 = vector.shape_cast %129 : vector<1x1x64xf32> to vector<1x64xf32>
    %131 = vector.broadcast %130 : vector<1x64xf32> to vector<8x64xf32>
    %132 = arith.addf %128, %131 : vector<8x64xf32>
    %c1_76 = arith.constant 1 : index
    %c0_77 = arith.constant 0 : index
    %c0_78 = arith.constant 0 : index
    %133 = vector.load %arg6[%c1_76, %c0_77, %c0_78] : memref<2x32x32xf32, #tpu.memory_space<vmem>>, vector<1x32x32xf32>
    %134 = vector.shape_cast %133 : vector<1x32x32xf32> to vector<32x32xf32>
    %cst_79 = arith.constant dense<0.000000e+00> : vector<8x32xf32>
    %135 = tpu.matmul %124, %134, %cst_79 {dimension_numbers = #tpu.dot_dimension_numbers<[1], [0], [0], [1], [0, 0, 1, 1], [], []>} : vector<8x32xf32>, vector<32x32xf32>, vector<8x32xf32> -> vector<8x32xf32>
    %c1_80 = arith.constant 1 : index
    %c0_81 = arith.constant 0 : index
    %c0_82 = arith.constant 0 : index
    %136 = vector.load %arg7[%c1_80, %c0_81, %c0_82] : memref<2x1x32xf32, #tpu.memory_space<vmem>>, vector<1x1x32xf32>
    %137 = vector.shape_cast %136 : vector<1x1x32xf32> to vector<1x32xf32>
    %138 = vector.broadcast %137 : vector<1x32xf32> to vector<8x32xf32>
    %139 = arith.addf %135, %138 : vector<8x32xf32>
    %140 = vector.extract_strided_slice %132 {offsets = [0, 0], sizes = [8, 32], strides = [1, 1]} : vector<8x64xf32> to vector<8x32xf32>
    %141 = vector.shape_cast %140 : vector<8x32xf32> to vector<1x8x4x8xf32>
    %142 = vector.extract_strided_slice %132 {offsets = [0, 32], sizes = [8, 32], strides = [1, 1]} : vector<8x64xf32> to vector<8x32xf32>
    %143 = vector.shape_cast %142 : vector<8x32xf32> to vector<1x8x4x8xf32>
    %144 = vector.shape_cast %139 : vector<8x32xf32> to vector<1x8x4x8xf32>
    %145 = vector.shape_cast %141 : vector<1x8x4x8xf32> to vector<8x4x8xf32>
    %146 = vector.shape_cast %143 : vector<1x8x4x8xf32> to vector<8x4x8xf32>
    "tpu.trace_start"() <{level = 10 : i32, message = "shd,thd->hst"}> : () -> ()
    %cst_83 = arith.constant dense<0.000000e+00> : vector<4x8x8xf32>
    %147 = tpu.matmul %145, %146, %cst_83 {dimension_numbers = #tpu.dot_dimension_numbers<[2], [2], [0], [0], [0, 1, 0, 0, 1, 0], [1], [1]>} : vector<8x4x8xf32>, vector<8x4x8xf32>, vector<4x8x8xf32> -> vector<4x8x8xf32>
    "tpu.trace_stop"() : () -> ()
    %cst_84 = arith.constant 0.353553385 : f32
    %148 = vector.broadcast %cst_84 : f32 to vector<4x8x8xf32>
    %149 = arith.mulf %147, %148 : vector<4x8x8xf32>
    %c0_85 = arith.constant 0 : index
    %c0_86 = arith.constant 0 : index
    %c0_87 = arith.constant 0 : index
    %150 = vector.load %arg3[%c0_85, %c0_86, %c0_87] : memref<1x1x8xf32, #tpu.memory_space<vmem>>, vector<1x1x8xf32>
    %151 = vector.shape_cast %150 : vector<1x1x8xf32> to vector<1x8xf32>
    %152 = vector.shape_cast %151 : vector<1x8xf32> to vector<1x1x8xf32>
    %153 = vector.broadcast %152 : vector<1x1x8xf32> to vector<4x8x8xf32>
    %154 = arith.addf %149, %153 : vector<4x8x8xf32>
    %cst_88 = arith.constant dense<0xFF800000> : vector<4x8xf32>
    %155 = vector.multi_reduction <maximumf>, %154, %cst_88 [2] : vector<4x8x8xf32> to vector<4x8xf32>
    %156 = vector.shape_cast %155 : vector<4x8xf32> to vector<4x8x1xf32>
    %157 = vector.broadcast %156 : vector<4x8x1xf32> to vector<4x8x8xf32>
    %158 = arith.subf %154, %157 : vector<4x8x8xf32>
    %159 = math.exp %158 : vector<4x8x8xf32>
    %cst_89 = arith.constant dense<0.000000e+00> : vector<4x8xf32>
    %160 = vector.multi_reduction <add>, %159, %cst_89 [2] : vector<4x8x8xf32> to vector<4x8xf32>
    %161 = vector.shape_cast %160 : vector<4x8xf32> to vector<4x8x1xf32>
    %162 = tpu.reciprocal %161 {approx = true} : vector<4x8x1xf32> -> vector<4x8x1xf32>
    %163 = vector.broadcast %162 : vector<4x8x1xf32> to vector<4x8x8xf32>
    %164 = arith.mulf %159, %163 : vector<4x8x8xf32>
    %165 = vector.shape_cast %144 : vector<1x8x4x8xf32> to vector<8x4x8xf32>
    "tpu.trace_start"() <{level = 10 : i32, message = "hst,thd->shd"}> : () -> ()
    %cst_90 = arith.constant dense<0.000000e+00> : vector<4x8x8xf32>
    %166 = tpu.matmul %165, %164, %cst_90 {dimension_numbers = #tpu.dot_dimension_numbers<[0], [2], [2], [1], [0, 1, 0, 2, 1, 1], [1], [0]>} : vector<8x4x8xf32>, vector<4x8x8xf32>, vector<4x8x8xf32> -> vector<4x8x8xf32>
    %167 = tpu.transpose %166, [2, 0, 1] : vector<4x8x8xf32> -> vector<8x4x8xf32>
    "tpu.trace_stop"() : () -> ()
    %168 = vector.shape_cast %167 : vector<8x4x8xf32> to vector<8x32xf32>
    %c1_91 = arith.constant 1 : index
    %c0_92 = arith.constant 0 : index
    %c0_93 = arith.constant 0 : index
    %169 = vector.load %arg8[%c1_91, %c0_92, %c0_93] : memref<2x32x32xf32, #tpu.memory_space<vmem>>, vector<1x32x32xf32>
    %170 = vector.shape_cast %169 : vector<1x32x32xf32> to vector<32x32xf32>
    %cst_94 = arith.constant dense<0.000000e+00> : vector<8x32xf32>
    %171 = tpu.matmul %168, %170, %cst_94 {dimension_numbers = #tpu.dot_dimension_numbers<[1], [0], [0], [1], [0, 0, 1, 1], [], []>} : vector<8x32xf32>, vector<32x32xf32>, vector<8x32xf32> -> vector<8x32xf32>
    %c1_95 = arith.constant 1 : index
    %c0_96 = arith.constant 0 : index
    %c0_97 = arith.constant 0 : index
    %172 = vector.load %arg9[%c1_95, %c0_96, %c0_97] : memref<2x1x32xf32, #tpu.memory_space<vmem>>, vector<1x1x32xf32>
    %173 = vector.shape_cast %172 : vector<1x1x32xf32> to vector<1x32xf32>
    %174 = vector.broadcast %173 : vector<1x32xf32> to vector<8x32xf32>
    %175 = arith.addf %171, %174 : vector<8x32xf32>
    %176 = arith.addf %124, %175 : vector<8x32xf32>
    %c1_98 = arith.constant 1 : index
    %c0_99 = arith.constant 0 : index
    %c0_100 = arith.constant 0 : index
    %177 = vector.load %arg14[%c1_98, %c0_99, %c0_100] : memref<2x1x32xf32, #tpu.memory_space<vmem>>, vector<1x1x32xf32>
    %178 = vector.shape_cast %177 : vector<1x1x32xf32> to vector<1x32xf32>
    %c1_101 = arith.constant 1 : index
    %c0_102 = arith.constant 0 : index
    %c0_103 = arith.constant 0 : index
    %179 = vector.load %arg15[%c1_101, %c0_102, %c0_103] : memref<2x1x32xf32, #tpu.memory_space<vmem>>, vector<1x1x32xf32>
    %180 = vector.shape_cast %179 : vector<1x1x32xf32> to vector<1x32xf32>
    %cst_104 = arith.constant dense<0.000000e+00> : vector<8xf32>
    %181 = vector.multi_reduction <add>, %176, %cst_104 [1] : vector<8x32xf32> to vector<8xf32>
    %182 = vector.shape_cast %181 : vector<8xf32> to vector<8x1xf32>
    %cst_105 = arith.constant 3.200000e+01 : f32
    %183 = vector.broadcast %cst_105 : f32 to vector<8x1xf32>
    %184 = arith.divf %182, %183 : vector<8x1xf32>
    %185 = vector.broadcast %184 : vector<8x1xf32> to vector<8x32xf32>
    %186 = arith.subf %176, %185 : vector<8x32xf32>
    %187 = arith.mulf %186, %186 : vector<8x32xf32>
    %cst_106 = arith.constant dense<0.000000e+00> : vector<8xf32>
    %188 = vector.multi_reduction <add>, %187, %cst_106 [1] : vector<8x32xf32> to vector<8xf32>
    %189 = vector.shape_cast %188 : vector<8xf32> to vector<8x1xf32>
    %cst_107 = arith.constant 3.200000e+01 : f32
    %190 = vector.broadcast %cst_107 : f32 to vector<8x1xf32>
    %191 = arith.divf %189, %190 : vector<8x1xf32>
    %192 = vector.broadcast %184 : vector<8x1xf32> to vector<8x32xf32>
    %193 = arith.subf %176, %192 : vector<8x32xf32>
    %cst_108 = arith.constant 9.99999974E-6 : f32
    %194 = vector.broadcast %cst_108 : f32 to vector<8x1xf32>
    %195 = arith.addf %191, %194 : vector<8x1xf32>
    %196 = math.rsqrt %195 : vector<8x1xf32>
    %197 = vector.broadcast %196 : vector<8x1xf32> to vector<8x32xf32>
    %198 = arith.mulf %193, %197 : vector<8x32xf32>
    %199 = vector.broadcast %178 : vector<1x32xf32> to vector<8x32xf32>
    %200 = arith.mulf %198, %199 : vector<8x32xf32>
    %201 = vector.broadcast %180 : vector<1x32xf32> to vector<8x32xf32>
    %202 = arith.addf %200, %201 : vector<8x32xf32>
    %c1_109 = arith.constant 1 : index
    %c0_110 = arith.constant 0 : index
    %c0_111 = arith.constant 0 : index
    %203 = vector.load %arg10[%c1_109, %c0_110, %c0_111] : memref<2x32x64xf32, #tpu.memory_space<vmem>>, vector<1x32x64xf32>
    %204 = vector.shape_cast %203 : vector<1x32x64xf32> to vector<32x64xf32>
    %cst_112 = arith.constant dense<0.000000e+00> : vector<8x64xf32>
    %205 = tpu.matmul %202, %204, %cst_112 {dimension_numbers = #tpu.dot_dimension_numbers<[1], [0], [0], [1], [0, 0, 1, 1], [], []>} : vector<8x32xf32>, vector<32x64xf32>, vector<8x64xf32> -> vector<8x64xf32>
    %c1_113 = arith.constant 1 : index
    %c0_114 = arith.constant 0 : index
    %c0_115 = arith.constant 0 : index
    %206 = vector.load %arg11[%c1_113, %c0_114, %c0_115] : memref<2x1x64xf32, #tpu.memory_space<vmem>>, vector<1x1x64xf32>
    %207 = vector.shape_cast %206 : vector<1x1x64xf32> to vector<1x64xf32>
    %208 = vector.broadcast %207 : vector<1x64xf32> to vector<8x64xf32>
    %209 = arith.addf %205, %208 : vector<8x64xf32>
    %cst_116 = arith.constant 0.000000e+00 : f32
    %210 = vector.broadcast %cst_116 : f32 to vector<8x64xf32>
    %211 = arith.maximumf %209, %210 : vector<8x64xf32>
    %c1_117 = arith.constant 1 : index
    %c0_118 = arith.constant 0 : index
    %c0_119 = arith.constant 0 : index
    %212 = vector.load %arg12[%c1_117, %c0_118, %c0_119] : memref<2x64x32xf32, #tpu.memory_space<vmem>>, vector<1x64x32xf32>
    %213 = vector.shape_cast %212 : vector<1x64x32xf32> to vector<64x32xf32>
    %cst_120 = arith.constant dense<0.000000e+00> : vector<8x32xf32>
    %214 = tpu.matmul %211, %213, %cst_120 {dimension_numbers = #tpu.dot_dimension_numbers<[1], [0], [0], [1], [0, 0, 1, 1], [], []>} : vector<8x64xf32>, vector<64x32xf32>, vector<8x32xf32> -> vector<8x32xf32>
    %c1_121 = arith.constant 1 : index
    %c0_122 = arith.constant 0 : index
    %c0_123 = arith.constant 0 : index
    %215 = vector.load %arg13[%c1_121, %c0_122, %c0_123] : memref<2x1x32xf32, #tpu.memory_space<vmem>>, vector<1x1x32xf32>
    %216 = vector.shape_cast %215 : vector<1x1x32xf32> to vector<1x32xf32>
    %217 = vector.broadcast %216 : vector<1x32xf32> to vector<8x32xf32>
    %218 = arith.addf %214, %217 : vector<8x32xf32>
    %219 = arith.addf %202, %218 : vector<8x32xf32>
    %c1_124 = arith.constant 1 : index
    %c0_125 = arith.constant 0 : index
    %c0_126 = arith.constant 0 : index
    %220 = vector.load %arg16[%c1_124, %c0_125, %c0_126] : memref<2x1x32xf32, #tpu.memory_space<vmem>>, vector<1x1x32xf32>
    %221 = vector.shape_cast %220 : vector<1x1x32xf32> to vector<1x32xf32>
    %c1_127 = arith.constant 1 : index
    %c0_128 = arith.constant 0 : index
    %c0_129 = arith.constant 0 : index
    %222 = vector.load %arg17[%c1_127, %c0_128, %c0_129] : memref<2x1x32xf32, #tpu.memory_space<vmem>>, vector<1x1x32xf32>
    %223 = vector.shape_cast %222 : vector<1x1x32xf32> to vector<1x32xf32>
    %cst_130 = arith.constant dense<0.000000e+00> : vector<8xf32>
    %224 = vector.multi_reduction <add>, %219, %cst_130 [1] : vector<8x32xf32> to vector<8xf32>
    %225 = vector.shape_cast %224 : vector<8xf32> to vector<8x1xf32>
    %cst_131 = arith.constant 3.200000e+01 : f32
    %226 = vector.broadcast %cst_131 : f32 to vector<8x1xf32>
    %227 = arith.divf %225, %226 : vector<8x1xf32>
    %228 = vector.broadcast %227 : vector<8x1xf32> to vector<8x32xf32>
    %229 = arith.subf %219, %228 : vector<8x32xf32>
    %230 = arith.mulf %229, %229 : vector<8x32xf32>
    %cst_132 = arith.constant dense<0.000000e+00> : vector<8xf32>
    %231 = vector.multi_reduction <add>, %230, %cst_132 [1] : vector<8x32xf32> to vector<8xf32>
    %232 = vector.shape_cast %231 : vector<8xf32> to vector<8x1xf32>
    %cst_133 = arith.constant 3.200000e+01 : f32
    %233 = vector.broadcast %cst_133 : f32 to vector<8x1xf32>
    %234 = arith.divf %232, %233 : vector<8x1xf32>
    %235 = vector.broadcast %227 : vector<8x1xf32> to vector<8x32xf32>
    %236 = arith.subf %219, %235 : vector<8x32xf32>
    %cst_134 = arith.constant 9.99999974E-6 : f32
    %237 = vector.broadcast %cst_134 : f32 to vector<8x1xf32>
    %238 = arith.addf %234, %237 : vector<8x1xf32>
    %239 = math.rsqrt %238 : vector<8x1xf32>
    %240 = vector.broadcast %239 : vector<8x1xf32> to vector<8x32xf32>
    %241 = arith.mulf %236, %240 : vector<8x32xf32>
    %242 = vector.broadcast %221 : vector<1x32xf32> to vector<8x32xf32>
    %243 = arith.mulf %241, %242 : vector<8x32xf32>
    %244 = vector.broadcast %223 : vector<1x32xf32> to vector<8x32xf32>
    %245 = arith.addf %243, %244 : vector<8x32xf32>
    %c0_135 = arith.constant 0 : index
    %c0_136 = arith.constant 0 : index
    %246 = vector.load %arg18[%c0_135, %c0_136] : memref<1x32xf32, #tpu.memory_space<vmem>>, vector<1x32xf32>
    %c0_137 = arith.constant 0 : index
    %c0_138 = arith.constant 0 : index
    %247 = vector.load %arg19[%c0_137, %c0_138] : memref<1x32xf32, #tpu.memory_space<vmem>>, vector<1x32xf32>
    %cst_139 = arith.constant dense<0.000000e+00> : vector<8xf32>
    %248 = vector.multi_reduction <add>, %245, %cst_139 [1] : vector<8x32xf32> to vector<8xf32>
    %249 = vector.shape_cast %248 : vector<8xf32> to vector<8x1xf32>
    %cst_140 = arith.constant 3.200000e+01 : f32
    %250 = vector.broadcast %cst_140 : f32 to vector<8x1xf32>
    %251 = arith.divf %249, %250 : vector<8x1xf32>
    %252 = vector.broadcast %251 : vector<8x1xf32> to vector<8x32xf32>
    %253 = arith.subf %245, %252 : vector<8x32xf32>
    %254 = arith.mulf %253, %253 : vector<8x32xf32>
    %cst_141 = arith.constant dense<0.000000e+00> : vector<8xf32>
    %255 = vector.multi_reduction <add>, %254, %cst_141 [1] : vector<8x32xf32> to vector<8xf32>
    %256 = vector.shape_cast %255 : vector<8xf32> to vector<8x1xf32>
    %cst_142 = arith.constant 3.200000e+01 : f32
    %257 = vector.broadcast %cst_142 : f32 to vector<8x1xf32>
    %258 = arith.divf %256, %257 : vector<8x1xf32>
    %259 = vector.broadcast %251 : vector<8x1xf32> to vector<8x32xf32>
    %260 = arith.subf %245, %259 : vector<8x32xf32>
    %cst_143 = arith.constant 9.99999974E-6 : f32
    %261 = vector.broadcast %cst_143 : f32 to vector<8x1xf32>
    %262 = arith.addf %258, %261 : vector<8x1xf32>
    %263 = math.rsqrt %262 : vector<8x1xf32>
    %264 = vector.broadcast %263 : vector<8x1xf32> to vector<8x32xf32>
    %265 = arith.mulf %260, %264 : vector<8x32xf32>
    %266 = vector.broadcast %246 : vector<1x32xf32> to vector<8x32xf32>
    %267 = arith.mulf %265, %266 : vector<8x32xf32>
    %268 = vector.broadcast %247 : vector<1x32xf32> to vector<8x32xf32>
    %269 = arith.addf %267, %268 : vector<8x32xf32>
    %270 = vector.shape_cast %269 : vector<8x32xf32> to vector<1x8x32xf32>
    %c0_144 = arith.constant 0 : index
    %c0_145 = arith.constant 0 : index
    %c0_146 = arith.constant 0 : index
    %271 = vector.load %arg20[%c0_144, %c0_145, %c0_146] : memref<1x8x32xf32, #tpu.memory_space<vmem>>, vector<1x8x32xf32>
    tpu.vector_store %arg20[%c0_144, %c0_145, %c0_146], %270 {strides = array<i32>} : memref<1x8x32xf32, #tpu.memory_space<vmem>>, vector<1x8x32xf32>,
    return
  }
  func.func @transform_0(%arg0: i32) -> (i32, i32, i32) {
    %c0_i32 = arith.constant 0 : i32
    %c0_i32_0 = arith.constant 0 : i32
    %c0_i32_1 = arith.constant 0 : i32
    return %arg0, %c0_i32, %c0_i32_0 : i32, i32, i32
  }
  func.func @transform_1(%arg0: i32) -> (i32, i32, i32) {
    %c0_i32 = arith.constant 0 : i32
    %c0_i32_0 = arith.constant 0 : i32
    %c0_i32_1 = arith.constant 0 : i32
    return %arg0, %c0_i32, %c0_i32_0 : i32, i32, i32
  }
  func.func @transform_2(%arg0: i32) -> (i32, i32, i32) {
    %c0_i32 = arith.constant 0 : i32
    %c0_i32_0 = arith.constant 0 : i32
    %c0_i32_1 = arith.constant 0 : i32
    return %arg0, %c0_i32, %c0_i32_0 : i32, i32, i32
  }
  func.func @transform_3(%arg0: i32) -> (i32, i32, i32) {
    %c0_i32 = arith.constant 0 : i32
    %c0_i32_0 = arith.constant 0 : i32
    %c0_i32_1 = arith.constant 0 : i32
    %c0_i32_2 = arith.constant 0 : i32
    return %c0_i32, %c0_i32_0, %c0_i32_1 : i32, i32, i32
  }
  func.func @transform_4(%arg0: i32) -> (i32, i32, i32) {
    %c0_i32 = arith.constant 0 : i32
    %c0_i32_0 = arith.constant 0 : i32
    %c0_i32_1 = arith.constant 0 : i32
    %c0_i32_2 = arith.constant 0 : i32
    return %c0_i32, %c0_i32_0, %c0_i32_1 : i32, i32, i32
  }
  func.func @transform_5(%arg0: i32) -> (i32, i32, i32) {
    %c0_i32 = arith.constant 0 : i32
    %c0_i32_0 = arith.constant 0 : i32
    %c0_i32_1 = arith.constant 0 : i32
    %c0_i32_2 = arith.constant 0 : i32
    return %c0_i32, %c0_i32_0, %c0_i32_1 : i32, i32, i32
  }
  func.func @transform_6(%arg0: i32) -> (i32, i32, i32) {
    %c0_i32 = arith.constant 0 : i32
    %c0_i32_0 = arith.constant 0 : i32
    %c0_i32_1 = arith.constant 0 : i32
    %c0_i32_2 = arith.constant 0 : i32
    return %c0_i32, %c0_i32_0, %c0_i32_1 : i32, i32, i32
  }
  func.func @transform_7(%arg0: i32) -> (i32, i32, i32) {
    %c0_i32 = arith.constant 0 : i32
    %c0_i32_0 = arith.constant 0 : i32
    %c0_i32_1 = arith.constant 0 : i32
    %c0_i32_2 = arith.constant 0 : i32
    return %c0_i32, %c0_i32_0, %c0_i32_1 : i32, i32, i32
  }
  func.func @transform_8(%arg0: i32) -> (i32, i32, i32) {
    %c0_i32 = arith.constant 0 : i32
    %c0_i32_0 = arith.constant 0 : i32
    %c0_i32_1 = arith.constant 0 : i32
    %c0_i32_2 = arith.constant 0 : i32
    return %c0_i32, %c0_i32_0, %c0_i32_1 : i32, i32, i32
  }
  func.func @transform_9(%arg0: i32) -> (i32, i32, i32) {
    %c0_i32 = arith.constant 0 : i32
    %c0_i32_0 = arith.constant 0 : i32
    %c0_i32_1 = arith.constant 0 : i32
    %c0_i32_2 = arith.constant 0 : i32
    return %c0_i32, %c0_i32_0, %c0_i32_1 : i32, i32, i32
  }
  func.func @transform_10(%arg0: i32) -> (i32, i32, i32) {
    %c0_i32 = arith.constant 0 : i32
    %c0_i32_0 = arith.constant 0 : i32
    %c0_i32_1 = arith.constant 0 : i32
    %c0_i32_2 = arith.constant 0 : i32
    return %c0_i32, %c0_i32_0, %c0_i32_1 : i32, i32, i32
  }
  func.func @transform_11(%arg0: i32) -> (i32, i32, i32) {
    %c0_i32 = arith.constant 0 : i32
    %c0_i32_0 = arith.constant 0 : i32
    %c0_i32_1 = arith.constant 0 : i32
    %c0_i32_2 = arith.constant 0 : i32
    return %c0_i32, %c0_i32_0, %c0_i32_1 : i32, i32, i32
  }
  func.func @transform_12(%arg0: i32) -> (i32, i32, i32) {
    %c0_i32 = arith.constant 0 : i32
    %c0_i32_0 = arith.constant 0 : i32
    %c0_i32_1 = arith.constant 0 : i32
    %c0_i32_2 = arith.constant 0 : i32
    return %c0_i32, %c0_i32_0, %c0_i32_1 : i32, i32, i32
  }
  func.func @transform_13(%arg0: i32) -> (i32, i32, i32) {
    %c0_i32 = arith.constant 0 : i32
    %c0_i32_0 = arith.constant 0 : i32
    %c0_i32_1 = arith.constant 0 : i32
    %c0_i32_2 = arith.constant 0 : i32
    return %c0_i32, %c0_i32_0, %c0_i32_1 : i32, i32, i32
  }
  func.func @transform_14(%arg0: i32) -> (i32, i32, i32) {
    %c0_i32 = arith.constant 0 : i32
    %c0_i32_0 = arith.constant 0 : i32
    %c0_i32_1 = arith.constant 0 : i32
    %c0_i32_2 = arith.constant 0 : i32
    return %c0_i32, %c0_i32_0, %c0_i32_1 : i32, i32, i32
  }
  func.func @transform_15(%arg0: i32) -> (i32, i32, i32) {
    %c0_i32 = arith.constant 0 : i32
    %c0_i32_0 = arith.constant 0 : i32
    %c0_i32_1 = arith.constant 0 : i32
    %c0_i32_2 = arith.constant 0 : i32
    return %c0_i32, %c0_i32_0, %c0_i32_1 : i32, i32, i32
  }
  func.func @transform_16(%arg0: i32) -> (i32, i32, i32) {
    %c0_i32 = arith.constant 0 : i32
    %c0_i32_0 = arith.constant 0 : i32
    %c0_i32_1 = arith.constant 0 : i32
    %c0_i32_2 = arith.constant 0 : i32
    return %c0_i32, %c0_i32_0, %c0_i32_1 : i32, i32, i32
  }
  func.func @transform_17(%arg0: i32) -> (i32, i32) {
    %c0_i32 = arith.constant 0 : i32
    %c0_i32_0 = arith.constant 0 : i32
    %c0_i32_1 = arith.constant 0 : i32
    return %c0_i32, %c0_i32_0 : i32, i32
  }
  func.func @transform_18(%arg0: i32) -> (i32, i32) {
    %c0_i32 = arith.constant 0 : i32
    %c0_i32_0 = arith.constant 0 : i32
    %c0_i32_1 = arith.constant 0 : i32
    return %c0_i32, %c0_i32_0 : i32, i32
  }
  func.func @transform_19(%arg0: i32) -> (i32, i32, i32) {
    %c0_i32 = arith.constant 0 : i32
    %c0_i32_0 = arith.constant 0 : i32
    %c0_i32_1 = arith.constant 0 : i32
    return %arg0, %c0_i32, %c0_i32_0 : i32, i32, i32
  }
}

</mosaic_0001>

<bundles_post_ra>
// kernel: tpu_custom_call.1
= control target key start
LH: loop header
LB: loop body
LE: loop exit
PB: predicated region body
PF: predicated region fallthrough
CT: control target
= control target key end

     0   :  { %s5801_s0 = inlined_call_operand.hbm [shape: f32[2,8,32], index: 0, kind: input, shape index: {}]   ;;  %s5802_s1 = inlined_call_operand.hbm [shape: f32[2,8,32], index: 1, kind: input, shape index: {}]   ;;  %s5803_s2 = inlined_call_operand.vmem [shape: f32[2,1,8], index: 2, kind: input, shape index: {}]   ;;  %s5804_s3 = inlined_call_operand.vmem [shape: f32[2,32,64], index: 3, kind: input, shape index: {}]   ;;  %s5805_s4 = inlined_call_operand.vmem [shape: f32[2,1,64], index: 4, kind: input, shape index: {}]   ;;  %s5806_s5 = inlined_call_operand.vmem [shape: f32[2,32,32], index: 5, kind: input, shape index: {}]   ;;  %s5807_s6 = inlined_call_operand.vmem [shape: f32[2,1,32], index: 6, kind: input, shape index: {}]   ;;  %s5808_s7 = inlined_call_operand.vmem [shape: f32[2,32,32], index: 7, kind: input, shape index: {}]   ;;  %s5809_s8 = inlined_call_operand.vmem [shape: f32[2,1,32], index: 8, kind: input, shape index: {}]   ;;  %s5810_s9 = inlined_call_operand.hbm [shape: f32[2,32,64], index: 9, kind: input, shape index: {}]   ;;  %s5811_s10 = inlined_call_operand.vmem [shape: f32[2,1,64], index: 10, kind: input, shape index: {}]   ;;  %s5812_s11 = inlined_call_operand.vmem [shape: f32[2,64,32], index: 11, kind: input, shape index: {}]   ;;  %s5813_s12 = inlined_call_operand.vmem [shape: f32[2,1,32], index: 12, kind: input, shape index: {}]   ;;  %s5814_s13 = inlined_call_operand.vmem [shape: f32[2,1,32], index: 13, kind: input, shape index: {}]   ;;  %s5815_s14 = inlined_call_operand.vmem [shape: f32[2,1,32], index: 14, kind: input, shape index: {}]   ;;  %s5816_s15 = inlined_call_operand.vmem [shape: f32[2,1,32], index: 15, kind: input, shape index: {}]   ;;  %s5817_s16 = inlined_call_operand.vmem [shape: f32[2,1,32], index: 16, kind: input, shape index: {}]   ;;  %s5818_s17 = inlined_call_operand.vmem [shape: f32[1,32], index: 17, kind: input, shape index: {}]   ;;  %s5819_s18 = inlined_call_operand.vmem [shape: f32[1,32], index: 18, kind: input, shape index: {}]   ;;  %s5820_s19 = inlined_call_operand.hbm [shape: f32[2,8,32], index: 19, kind: output, shape index: {}]  }
   0x1   :  { %5845 = sst [smem:[#allocation19_spill]] %s5801_s0 }
   0x2   :  { %5846 = sst [smem:[#allocation20_spill]] %s5802_s1 }
   0x3   :  { %5847 = sst [smem:[#allocation21_spill]] %s5803_s2 }
   0x4   :  { %5848 = sst [smem:[#allocation22_spill]] %s5804_s3 }
   0x5   :  { %5849 = sst [smem:[#allocation23_spill]] %s5805_s4 }
   0x6   :  { %5850 = sst [smem:[#allocation24_spill]] %s5806_s5 }
   0x7   :  { %5851 = sst [smem:[#allocation25_spill]] %s5807_s6 }
   0x8   :  { %5852 = sst [smem:[#allocation26_spill]] %s5810_s9 }
   0x9   :  { %5853 = sst [smem:[#allocation27_spill]] %s5811_s10 }
   0xa   :  { %5854 = sst [smem:[#allocation28_spill]] %s5813_s12 }
   0xb   :  { %5855 = sst [smem:[#allocation29_spill]] %s5816_s15 }
   0xc   :  { %5856 = sst [smem:[#allocation30_spill]] %s5817_s16 }
   0xd   :  { %5857 = sst [smem:[#allocation31_spill]] %s5818_s17 }
   0xe   :  { %5858 = sst [smem:[#allocation32_spill]] %s5819_s18 }
   0xf   :  { %5859 = sst [smem:[#allocation33_spill]] %s5820_s19 }
  0x10   :  { %24 = vsyncpa [#allocation3], 0 }
  0x11   :  { %26 = vsyncpa [#allocation3 + $0x1], 0 }
  0x12   :  { %27 = vsyncpa [#allocation6], 0 }
  0x13   :  { %29 = vsyncpa [#allocation6 + $0x1], 0 }
  0x14   :  { %30 = vsyncpa [#allocation4], 0 }
  0x15   :  { %32 = vsyncpa [#allocation4 + $0x1], 0  ;;  %s5136_s0 = smov 0   ;;  %s5138_s30 = smov 0  }
  0x16   :  { %s5140_s20 = smov 0   ;;  %s5142_s21 = smov 0  }
  0x17 LB: > { %5860 = sst [smem:[#allocation13_spill]] %s5004_s0  ;;  %s5157_s1 = sadd.s32 4294967295, %s5016_s21   ;;  %s5016_s21 = sphi %s5142_s21, %s5903_s21   ;;  %s5012_s20 = sphi %s5140_s20, %s5905_s20   ;;  %s5008_s30 = sphi %s5138_s30, %s5907_s30   ;;  %s5004_s0 = sphi %s5136_s0, %s5906_s0  }
  0x18   : > { %5861 = sst [smem:[#allocation14_spill]] %s5012_s20  ;;  %s4262_s22 = sadd.s32 4294967294, %s5016_s21  }
  0x19   : > { %p58_p0 = scmp.ne.s32.totalorder %s5008_s30, %s5004_s0  ;;  %p5829_p1 = scmp.eq.s32.totalorder %s5157_s1, 0 }
  0x1a   : > { %p476_p3 = scmp.eq.s32.totalorder %s4262_s22, 1  ;;  %p4263_p5 = scmp.ge.s32.totalorder %s5016_s21, 1 }
  0x1b   : > { %p5166_p4 = por %p5829_p1, %p58_p0  ;;  %p483_p7 = scmp.lt.s32.totalorder %s5016_s21, 3 }
  0x1c   : > { %p5171_p6 = por %p476_p3, %p58_p0  ;;  %s5018_s25 = smov [#allocation7]  }
  0x1d   : > { %s5862_s2 = scalar_select %p5166_p4, 1, 0 }
  0x1e   : > { %s5863_s23 = scalar_select %p5171_p6, 1, 0 }
  0x1f   : > { %p5176_p8 = pnand %p4263_p5, %p483_p7  ;;  %s513_s3 = sshll.u32 %s5018_s25, 4  ;;  %s5180_s3 = int_to_ptr.vmem [resolvable:$true] %s513_s3 }
  0x20   : > { %5864 = sst [smem:[#allocation15_spill]] %s5863_s23  ;;  %s5192_s27 = sadd.s32 1, %s5016_s21  }
  0x21   : > { %s5865_s24 = scalar_select %p5176_p8, 1, 0 }
  0x22   : > { %p4746_p9 = pneg %p5176_p8  ;;  %5867 = sst [smem:[#allocation16_spill]] %s5192_s27 }
  0x23   : > { %s45_s28 = sadd.s32 1, %s5012_s20  ;;  %s42_s29 = ssub.s32 %s5016_s21, %s5192_s27 }
  0x24   : > { %p5187_p11 = pnand %p4746_p9, %p5829_p1  ;;  %s5868_s9 = sld [smem:[#allocation26_spill]] }
  0x26   : > { %p4856_p13 = pneg %p5187_p11 }
  0x2a   : > { %s4854_s25 = scalar_lea.hbm %s5868_s9, 1024 }
  0x2b   : > { %p4855_p12 = scmp.ne.s32.totalorder %s5868_s9, %s4854_s25  ;;  %p4861_p5 = scmp.lt.u32.totalorder %s4854_s25, %s5868_s9 }
  0x2d   : > { %p4857_p0 = pnand %p4856_p13, %p4855_p12 }
  0x2f   : > { %p4858_p3 = pneg %p4857_p0 }
  0x31   : > { %p4863_p7 = pnand %p4861_p5, %p4858_p3 }
  0x33   : > { %4866 = shalt.err (!%p4863_p7)
}
  0x34   : > { %s4867_s27 = scalar_lea.vmem %s5180_s3, 1024  ;;  %p4875_p2 = scmp.lt.s32.totalorder %s5180_s3, %s5180_s3 }
  0x35   : > { %p4868_p9 = scmp.ne.s32.totalorder %s5180_s3, %s4867_s27  ;;  %p4876_p6 = scmp.lt.s32.totalorder %s4867_s27, %s4867_s27 }
  0x37   : > { %p4870_p10 = pnand %p4868_p9, %p4856_p13  ;;  %p4877_p4 = por %p4876_p6, %p4875_p2 }
  0x39   : > { %p4871_p1 = pneg %p4870_p10 }
  0x3b   : > { %p4878_p8 = pnand %p4877_p4, %p4871_p1 }
  0x3d   : > { %4881 = shalt.err (!%p4878_p8)
}
  0x3e   : > { %s5019_s19 = smov 128   ;;  %s5020_s17 = smov 8  }
  0x3f   : > { %4749 = dma.hbm_to_vmem [thread:$0]  (!%p5187_p11), %s5868_s9, 1024, %s5180_s3, [#allocation6], %s5019_s19, %s5019_s19, %s5020_s17  }
  0x40   : > { %p43_p2 = scmp.eq.s32.totalorder %s42_s29, 0  ;;  %p52_p1 = scmp.ne.s32.totalorder %s5012_s20, %s5008_s30 }
  0x41   : > { %p53_p4 = scmp.eq.s32.totalorder %s5016_s21, 0  ;;  %p4762_p6 = scmp.lt.s32.totalorder %s5016_s21, 2 }
  0x42   : > { %s5223_s23 = scalar_select %p43_p2, %s5012_s20, %s45_s28  }
  0x43   : > { %p54_p8 = por %p53_p4, %p52_p1  ;;  %p5870_p10 = scmp.eq.s32.totalorder %s5157_s1, 1 }
  0x44   : > { %5869 = sst [smem:[#allocation17_spill]] %s5223_s23  ;;  %s554_s22 = sand.u32 1, %s5012_s20  }
  0x45   : > { %p5227_p12 = por %p5870_p10, %p52_p1  ;;  %s4267_s25 = sshll.u32 %s5016_s21, 7 }
  0x46   : > { %s5233_s16 = sshll.u32 %s554_s22, 3  ;;  %s5873_s18 = sld [smem:[#allocation19_spill]] }
  0x47   : > { %s5871_s27 = scalar_select %p5227_p12, 1, 0 }
  0x48   : > { %s558_s28 = scalar_lea.vmem [#allocation2], %s5233_s16  ;;  %p5241_p11 = pnand %p4762_p6, %p54_p8 }
  0x49   : > { %5872 = sst [smem:[#allocation18_spill]] %s5871_s27  ;;  %s565_s29 = sshll.u32 %s558_s28, 4  ;;  %s5245_s29 = int_to_ptr.vmem [resolvable:$true] %s565_s29 }
  0x4a   : > { %s5875_s15 = sld [smem:[#allocation20_spill]]  ;;  %s555_s9 = scalar_lea.sflag [#allocation3], %s554_s22 }
  0x4b   : > { %p4884_p0 = pneg %p5241_p11 }
  0x4c   : > { %s5238_s3 = scalar_lea.hbm %s5873_s18, %s4267_s25  ;;  %s4887_s27 = scalar_lea.hbm %s5873_s18, 256 }
  0x4d   : > { %s4882_s23 = scalar_lea.hbm %s5238_s3, 128  ;;  %p4888_p7 = scmp.lt.u32.totalorder %s5238_s3, %s5873_s18 }
  0x4e   : > { %p4883_p13 = scmp.ne.s32.totalorder %s5238_s3, %s4882_s23  ;;  %p4889_p9 = scmp.lt.u32.totalorder %s4887_s27, %s4882_s23 }
  0x4f   : > { %p4891_p1 = scmp.lt.u32.totalorder %s4882_s23, %s5238_s3 }
  0x50   : > { %s5250_s26 = scalar_lea.hbm %s5875_s15, %s4267_s25  ;;  %p4885_p3 = pnand %p4884_p0, %p4883_p13 }
  0x51   : > { %p4890_p2 = por %p4889_p9, %p4888_p7 }
  0x52   : > { %p4886_p5 = pneg %p4885_p3 }
  0x53   : > { %p4892_p4 = por %p4891_p1, %p4890_p2 }
  0x55   : > { %p4893_p6 = pnand %p4892_p4, %p4886_p5 }
  0x57   : > { %4896 = shalt.err (!%p4893_p6)
}
  0x58   : > { %s4897_s22 = scalar_lea.vmem %s5245_s29, 128  ;;  %s5021_s20 = smov [#allocation2]  }
  0x59   : > { %p4898_p8 = scmp.ne.s32.totalorder %s5245_s29, %s4897_s22  ;;  %s4902_s25 = sshll.u32 %s5021_s20, 4  ;;  %s4903_s25 = int_to_ptr.vmem [resolvable:$false] %s4902_s25 }
  0x5a   : > { %s4904_s10 = scalar_lea.vmem %s4903_s25, 256  ;;  %p4905_p3 = scmp.lt.s32.totalorder %s5245_s29, %s4903_s25 }
  0x5b   : > { %p4900_p10 = pnand %p4898_p8, %p4884_p0  ;;  %p4906_p7 = scmp.lt.s32.totalorder %s4904_s10, %s4897_s22 }
  0x5d   : > { %p4901_p13 = pneg %p4900_p10  ;;  %p4907_p9 = por %p4906_p7, %p4905_p3 }
  0x5f   : > { %p4908_p2 = pnand %p4907_p9, %p4901_p13 }
  0x61   : > { %4911 = shalt.err (!%p4908_p2)
}
  0x62   : > { %4753 = dma.hbm_to_vmem [thread:$0]  (!%p5241_p11), %s5238_s3, 128, %s5245_s29, %s555_s9  }
  0x63   : > { %s572_s12 = sand.u32 1, %s5016_s21   ;;  %s576_s23 = scalar_lea.vmem [#allocation5], %s5233_s16 }
  0x64   : > { %s583_s27 = sshll.u32 %s576_s23, 4  ;;  %s573_s17 = scalar_lea.sflag [#allocation6], %s572_s12  ;;  %s584_s27 = int_to_ptr.vmem [resolvable:$true] %s583_s27 }
  0x65   : > { %s4912_s0 = scalar_lea.hbm %s5250_s26, 128  ;;  %s4917_s20 = scalar_lea.hbm %s5875_s15, 256 }
  0x66   : > { %p4913_p5 = scmp.ne.s32.totalorder %s5250_s26, %s4912_s0  ;;  %p4918_p6 = scmp.lt.u32.totalorder %s5250_s26, %s5875_s15 }
  0x67   : > { %p4919_p8 = scmp.lt.u32.totalorder %s4917_s20, %s4912_s0  ;;  %p4921_p13 = scmp.lt.u32.totalorder %s4912_s0, %s5250_s26 }
  0x68   : > { %p4915_p1 = pnand %p4913_p5, %p4884_p0 }
  0x69   : > { %p4920_p10 = por %p4919_p8, %p4918_p6 }
  0x6a   : > { %p4916_p4 = pneg %p4915_p1 }
  0x6b   : > { %p4922_p3 = por %p4921_p13, %p4920_p10 }
  0x6d   : > { %p4923_p7 = pnand %p4922_p3, %p4916_p4 }
  0x6f   : > { %4926 = shalt.err (!%p4923_p7)
}
  0x70   : > { %s4927_s9 = scalar_lea.vmem %s584_s27, 128  ;;  %s5022_s16 = smov [#allocation5]  }
  0x71   : > { %p4928_p9 = scmp.ne.s32.totalorder %s584_s27, %s4927_s9  ;;  %s4932_s3 = sshll.u32 %s5022_s16, 4  ;;  %s4933_s3 = int_to_ptr.vmem [resolvable:$false] %s4932_s3 }
  0x72   : > { %s4934_s29 = scalar_lea.vmem %s4933_s3, 256  ;;  %p4935_p1 = scmp.lt.s32.totalorder %s584_s27, %s4933_s3 }
  0x73   : > { %p4930_p2 = pnand %p4928_p9, %p4884_p0  ;;  %p4936_p12 = scmp.lt.s32.totalorder %s4934_s29, %s4927_s9 }
  0x75   : > { %p4931_p5 = pneg %p4930_p2  ;;  %p4937_p6 = por %p4936_p12, %p4935_p1 }
  0x77   : > { %p4938_p8 = pnand %p4937_p6, %p4931_p5 }
  0x79   : > { %4941 = shalt.err (!%p4938_p8)
}
  0x7a   : > { %4756 = dma.hbm_to_vmem [thread:$0]  (!%p5241_p11), %s5250_s26, 128, %s584_s27, %s573_s17  }
  0x7b   : > { %p5876_p4 = scmp.ne.s32.totalorder %s5865_s24, 0 }
  0x7c   : > { %s5301_s12 = sand.u32 (!%p5876_p4), 1, %s5008_s30   ;;  %p5877_p12 = scmp.ne.s32.totalorder (!%p5876_p4), %s5862_s2, 0 }
  0x7d   : > { %598 = sbr.rel (%p5876_p4) target bundleno = 6263 (0x1877), region = 96  ;;  %s5304_s23 = sshll.u32 (!%p5876_p4), %s5301_s12, 3 }
  0x7e   : > { %s601_s0 = scalar_lea.sflag (!%p5876_p4), [#allocation3], %s5301_s12  ;;  %s604_s28 = scalar_lea.vmem (!%p5876_p4), [#allocation2], %s5304_s23 }
  0x84   : > { %4987 = dma.done.wait (%p5877_p12), %s601_s0, 128  }
  0x85   : > { %4989 = vsyncadd (%p5877_p12), %s601_s0, 4294967168  ;;  %s609_s24 = sand.u32 1, %s5157_s1   ;;  %s613_s26 = scalar_lea.vmem [#allocation5], %s5304_s23 }
  0x86   : > { %s610_s19 = scalar_lea.sflag [#allocation6], %s609_s24 }
  0x87   : > { %4991 = dma.done.wait (%p5877_p12), %s610_s19, 128  }
  0x88   : > { %4993 = vsyncadd (%p5877_p12), %s610_s19, 4294967168  ;;  %p5878_p11 = scmp.eq.s32.totalorder %s5157_s1, 0 }
  0x8a   : > { %4995 = dma.done.wait (%p5878_p11), [#allocation6], 1024   ;;  %p5879_p0 = pmov %p5878_p11 }
  0x8b   : > { %v5023_v0 = vmov 0.0|0.0   ;;  %vm5024_vm0 = vmmov 0   ;;  %v5025_v1 = vmov 0.0   ;;  %s5880_s17 = sld [smem:[#allocation22_spill]]  ;;  %v5340_v8 = vld [vmem:[%s604_s28] sm:$0xff]  ;;  %v5342_v9 = vld [vmem:[%s613_s26] sm:$0xff] }
  0x8c   : > { %4997 = vsyncadd (%p5879_p0), [#allocation6], 4294966272  ;;  %4664 = vmatprep.subr.bf16.mxu1 %v5023_v0  ;;  %4466 = vmatprep.mubr.msk.f32.mxu1 %vm5024_vm0, %v5025_v1  ;;  %v685_v10 = vadd.f32 %v5342_v9, %v5340_v8  ;;  %vm697_vm1 = vcmask 261120   ;;  %s5881_s4 = sld [smem:[#allocation23_spill]]  ;;  %s5026_s0 = smov 104   ;;  %vm1002_vm2 = vcmask 64512  }
  0x8d   : > { %4480 = vmatprep.subr.mxu0 %v5025_v1  ;;  %4482 = vmatprep.mubr.msk.f32.mxu0 %vm5024_vm0, %v5025_v1  ;;  %s5027_s28 = smov 120   ;;  %s5843_s24 = smov 96   ;;  %vm2069_vm3 = vcmask 130048   ;;  %vm2071_vm4 = vcmask 195584   ;;  %vm2288_vm5 = vcmask 523264  }
  0x8e   : > { %s5029_s19 = smov 112   ;;  %s5882_s5 = sld [smem:[#allocation24_spill]] }
  0x8f   : > { %p680_p10 = scmp.lt.s32.totalorder %s5157_s1, 1  ;;  %s5883_s26 = sld [smem:[#allocation21_spill]] }
  0x90   : > { %s5884_s6 = sld [smem:[#allocation25_spill]]  ;;  %s5841_s27 = smov 8  }
  0x91   : > { %v686_v2 = vld [vmem:[%s5880_s17] sm:$0xff]  ;;  %v687_v3 = vld [vmem:[%s5880_s17 + $0x8] sm:$0xff]  ;;  %v688_v4 = vld [vmem:[%s5880_s17 + $0x10] sm:$0xff]  ;;  %s681_s16 = scalar_select %p680_p10, %s5157_s1, 1 }
  0x92   : > { %v4665_v5 = vpack.c.bf16 %v687_v3, %v686_v2  ;;  %v689_v6 = vld [vmem:[%s5880_s17 + $0x18] sm:$0xff]  ;;  %v4275_v11 = vld [vmem:[%s5881_s4] ss:$0 sm:$0xff]  ;;  %s5840_s22 = smov 24   ;;  %s5885_s29 = sld [smem:[#allocation27_spill]] }
  0x93   : > { %v4668_v7 = vpack.c.bf16 %v689_v6, %v688_v4  ;;  %s5886_s20 = sld [smem:[#allocation28_spill]]  ;;  %s5893_s10 = smov 24  }
  0x94   : > { %4666 = vmatpush3.bf16.msra.mxu1 %v4665_v5  ;;  %v771_v19 = vld [vmem:[%s5882_s5] sm:$0xff]  ;;  %v772_v20 = vld [vmem:[%s5882_s5 + $0x8] sm:$0xff]  ;;  %v773_v21 = vld [vmem:[%s5882_s5 + $0x10] sm:$0xff]  ;;  %s5896_s9 = sld [smem:[#allocation32_spill]]  ;;  %s4365_s3 = sshll.u32 %s5157_s1, 7 }
  0x95   : > { %4667 = vmatprep.subr.bf16.mxu1 %v5023_v0  ;;  %v4671_v22 = vpack.c.bf16 %v772_v20, %v771_v19  ;;  %v774_v23 = vld [vmem:[%s5882_s5 + $0x18] sm:$0xff]  ;;  %s682_s2 = scalar_lea.vmem %s5883_s26, %s681_s16  ;;  %s5888_s16 = sld [smem:[#allocation29_spill]] }
  0x96   : > { %v4674_v24 = vpack.c.bf16 %v774_v23, %v773_v21  ;;  %v5400_v35 = vld [vmem:[%s682_s2] ss:$0 sm:$0xff]  ;;  %s5842_s2 = smov 16   ;;  %s5889_s26 = sld [smem:[#allocation30_spill]] }
  0x97   : > { %v4277_v55 = vld [vmem:[%s5884_s6] ss:$0 sm:$0xff]  ;;  %s5035_s1 = smov [#allocation8]  }
  0x98   : > { %4669 = vmatpush3.bf16.msra.mxu1 %v4668_v7 }
  0x99   : > { %4670 = vmatprep.subr.bf16.mxu1 %v5023_v0  ;;  %s5887_s25 = smov %s5886_s20 }
  0x9b   : > { %4467 = vmatmul.mubr.msk.f32.vlgmr.msra.gmra.mrb[0].mxu1 %vm697_vm1, %v685_v10 }
  0x9c   : > { %4477 = vmatprep.mubr.msk.f32.mxu1 %vm5024_vm0, %v5025_v1  ;;  %4672 = vmatpush3.bf16.msra.mxu1 %v4671_v22 }
  0x9d   : > { %4673 = vmatprep.subr.bf16.mxu1 %v5023_v0 }
  0xa0   : > { %4675 = vmatpush3.bf16.msra.mxu1 %v4674_v24 }
  0xa1   : > { %4485 = vmatprep.subr.mxu1 %v5025_v1 }
  0xa3   : > { %4478 = vmatmul.mubr.msk.f32.vlgmr.msra.gmra.mrb[2].mxu1 %vm697_vm1, %v5340_v8 }
  0xa4   : > { %4487 = vmatprep.mubr.msk.f32.mxu1 %vm5024_vm0, %v5025_v1 }
 0x16e   : > { %v767_v12 = vpop.f32.mrb[0].mxu1 }
 0x16f   : > { %v768_v13 = vadd.f32 %v4275_v11, %v767_v12  ;;  %v4468_v14 = vpop.f32.mrb[1].mxu1 }
 0x171   : > { %860 = vrot.lane.b32.xlu1 %v768_v13, %s5026_s0  ;;  %856 = vrot.lane.b32.xlu0 %v768_v13, %s5027_s28 }
 0x175   : > { %862 = vrot.lane.b32.xlu1 %v768_v13, %s5843_s24  ;;  %858 = vrot.lane.b32.xlu0 %v768_v13, %s5029_s19 }
 0x176   : > { %v851_v32 = vpop.f32.mrb[2].mxu1 }
 0x177   : > { %v4479_v33 = vpop.f32.mrb[3].mxu1  ;;  %v852_v56 = vadd.f32 %v4277_v55, %v851_v32 }
 0x1e3   : > { %v857_v15 = vpop.permute.xlu0 %856  ;;  %v861_v16 = vpop.permute.xlu1 %860 }
 0x1e4   : > { %864 = vrot.lane.b32.xlu0 %v857_v15, %s5843_s24 }
 0x1e7   : > { %v859_v17 = vpop.permute.xlu0 %858  ;;  %v863_v18 = vpop.permute.xlu1 %862 }
 0x1e8   : > { %868 = vrot.lane.b32.xlu0 %v861_v16, %s5843_s24  ;;  %866 = vrot.lane.b32.xlu1 %v859_v17, %s5843_s24 }
 0x211   : > { %874 = vxpose.xlu1.b32.start.end [1/1] (short) (narrow) %v863_v18, 8 }
 0x256   : > { %v865_v25 = vpop.permute.xlu0 %864 }
 0x257   : > { %906 = vxpose.xlu0.b32.start.end [1/1] (short) (narrow) %v865_v25, 8 }
 0x25a   : > { %v867_v26 = vpop.permute.xlu1 %866  ;;  %v869_v27 = vpop.permute.xlu0 %868 }
 0x25b   : > { %938 = vxpose.xlu0.b32.start.end [1/1] (short) (narrow) %v867_v26, 8 }
 0x25f   : > { %970 = vxpose.xlu0.b32.start.end [1/1] (short) (narrow) %v869_v27, 8 }
 0x291   : > { %v890_v28 = vpop.trf.xlu1 }
 0x292   : > { %4481 = vmatpush3.msra.mxu0 %v890_v28 }
 0x293   : > { %4483 = vmatmul.mubr.msk.f32.vlgmr.msra.gmra.mrb[0].mxu0 %vm1002_vm2, %v768_v13  ;;  %4490 = vmatprep.subr.mxu0 %v5025_v1 }
 0x294   : > { %4492 = vmatprep.mubr.msk.f32.mxu0 %vm5024_vm0, %v5025_v1 }
 0x2d7   : > { %v922_v29 = vpop.trf.xlu0 }
 0x2d8   : > { %4486 = vmatpush3.msra.mxu1 %v922_v29 }
 0x2d9   : > { %4488 = vmatmul.mubr.msk.f32.vlgmr.msra.gmra.mrb[4].mxu1 %vm1002_vm2, %v857_v15  ;;  %4495 = vmatprep.subr.mxu1 %v5025_v1 }
 0x2da   : > { %4497 = vmatprep.mubr.msk.f32.mxu1 %vm5024_vm0, %v5025_v1 }
 0x2db   : > { %v954_v30 = vpop.trf.xlu0 }
 0x2dc   : > { %4491 = vmatpush3.msra.mxu0 %v954_v30 }
 0x2dd   : > { %4493 = vmatmul.mubr.msk.f32.vlgmr.msra.gmra.mrb[2].mxu0 %vm1002_vm2, %v859_v17  ;;  %4500 = vmatprep.subr.mxu0 %v5025_v1 }
 0x2de   : > { %4502 = vmatprep.mubr.msk.f32.mxu0 %vm5024_vm0, %v5025_v1 }
 0x2df   : > { %v986_v31 = vpop.trf.xlu0 }
 0x2e0   : > { %4496 = vmatpush3.msra.mxu1 %v986_v31 }
 0x2e1   : > { %4498 = vmatmul.mubr.msk.f32.vlgmr.msra.gmra.mrb[6].mxu1 %vm1002_vm2, %v861_v16  ;;  %4505 = vmatprep.subr.mxu1 %v5025_v1 }
 0x2e2   : > { %4507 = vmatprep.mubr.msk.f32.mxu1 %vm5024_vm0, %v5025_v1 }
 0x366   : > { %v1071_v34 = vpop.f32.mrb[0].mxu0 }
 0x367   : > { %v1291_v36 = vmul.f32 0.35355338, %v1071_v34  ;;  %v4484_v37 = vpop.f32.mrb[1].mxu0 }
 0x369   : > { %v1302_v38 = vadd.f32 %v5400_v35, %v1291_v36 }
 0x36b   : > { %v1306_v39 = vsel %vm1002_vm2, %v1302_v38, -inf }
 0x36c   : > { %1307 = vmax.xlane.f32.xlu1 %v1306_v39 }
 0x3ac   : > { %v1143_v40 = vpop.f32.mrb[4].mxu1 }
 0x3ad   : > { %v1292_v41 = vmul.f32 0.35355338, %v1143_v40  ;;  %v4489_v42 = vpop.f32.mrb[5].mxu1 }
 0x3af   : > { %v1303_v43 = vadd.f32 %v5400_v35, %v1292_v41 }
 0x3b0   : > { %v1215_v44 = vpop.f32.mrb[2].mxu0 }
 0x3b1   : > { %v1293_v45 = vmul.f32 0.35355338, %v1215_v44  ;;  %v4494_v46 = vpop.f32.mrb[3].mxu0  ;;  %v1309_v47 = vsel %vm1002_vm2, %v1303_v43, -inf }
 0x3b2   : > { %1310 = vmax.xlane.f32.xlu0 %v1309_v47  ;;  %v2074_v46 = vld [vmem:[%s5808_s7 + $0x8] sm:$0xff] }
 0x3b3   : > { %v1304_v48 = vadd.f32 %v5400_v35, %v1293_v45  ;;  %v2073_v45 = vld [vmem:[%s5808_s7] sm:$0xff] }
 0x3b4   : > { %v1287_v49 = vpop.f32.mrb[6].mxu1  ;;  %v4677_v47 = vpack.c.bf16 %v2074_v46, %v2073_v45 }
 0x3b5   : > { %v1294_v50 = vmul.f32 0.35355338, %v1287_v49  ;;  %v4499_v51 = vpop.f32.mrb[7].mxu1  ;;  %v1312_v52 = vsel %vm1002_vm2, %v1304_v48, -inf }
 0x3b6   : > { %1313 = vmax.xlane.f32.xlu1 %v1312_v52  ;;  %v5031_v52 = vmov 1934713408  }
 0x3b7   : > { %v1305_v53 = vadd.f32 %v5400_v35, %v1294_v50  ;;  %v1925_v50 = vlaneseq }
 0x3b9   : > { %v1315_v54 = vsel %vm1002_vm2, %v1305_v53, -inf  ;;  %v1926_v55 = vshrl.u32 %v1925_v50, 7 }
 0x3ba   : > { %1316 = vmax.xlane.f32.xlu1 %v1315_v54 }
 0x3c8   : > { %1351 = vrot.lane.b32.xlu0 %v852_v56, %s5027_s28 }
 0x3cb   : > { %1354 = vrot.lane.b32.xlu1 %v852_v56, %s5029_s19 }
 0x3cf   : > { %1357 = vrot.lane.b32.xlu1 %v852_v56, %s5026_s0 }
 0x3f9   : > { %v1308_v57 = vpop.xlane.xlu1 %1307 }
 0x3fa   : > { %v1318_v58 = vsub.f32 %v1302_v38, %v1308_v57 }
 0x3fc   : > { %v1322_v59 = vmul.f32 1.442695, %v1318_v58 }
 0x3fe   : > { %4812 = vpow2.f32 %v1322_v59 }
 0x408   : > { %v4813_v60 = vpop.eup %4812 }
 0x409   : > { %v1330_v61 = vsel %vm1002_vm2, %v4813_v60, 0.0 }
 0x40a   : > { %1331 = vadd.xlane.f32.xlu0 %v1330_v61 }
 0x43f   : > { %v1311_v62 = vpop.xlane.xlu0 %1310 }
 0x440   : > { %v1319_v63 = vsub.f32 %v1303_v43, %v1311_v62 }
 0x442   : > { %v1324_v2 = vmul.f32 1.442695, %v1319_v63 }
 0x443   : > { %v1314_v3 = vpop.xlane.xlu1 %1313  ;;  %v1352_v18 = vpop.permute.xlu0 %1351 }
 0x444   : > { %4814 = vpow2.f32 %v1324_v2  ;;  %v1320_v4 = vsub.f32 %v1304_v48, %v1314_v3  ;;  %v5030_v48 = vmov 1983009808  }
 0x445   : > { %v1923_v49 = vunpack.c.l.s4 %v5030_v48  ;;  %v4294_v48 = vld [vmem:[%s5809_s8] ss:$0 sm:$0xff] }
 0x446   : > { %v1326_v5 = vmul.f32 1.442695, %v1320_v4 }
 0x447   : > { %v1317_v6 = vpop.xlane.xlu1 %1316  ;;  %v1924_v54 = vunpack.c.0.s8 %v1923_v49 }
 0x448   : > { %4816 = vpow2.f32 %v1326_v5  ;;  %v1321_v7 = vsub.f32 %v1305_v53, %v1317_v6  ;;  %v1955_v53 = vunpack.c.l.s4 %v5031_v52 }
 0x449   : > { %v5447_v58 = vsub.s32 %v1924_v54, %v1926_v55 }
 0x44a   : > { %v1328_v10 = vmul.f32 1.442695, %v1321_v7  ;;  %v1956_v57 = vunpack.c.0.s8 %v1955_v53 }
 0x44b   : > { %v1355_v17 = vpop.permute.xlu1 %1354 }
 0x44c   : > { %4818 = vpow2.f32 %v1328_v10  ;;  %v5449_v3 = vsub.s32 %v1956_v57, %v1926_v55 }
 0x44e   : > { %v4815_v11 = vpop.eup %4814 }
 0x44f   : > { %v1333_v12 = vsel %vm1002_vm2, %v4815_v11, 0.0  ;;  %v1358_v19 = vpop.permute.xlu1 %1357 }
 0x450   : > { %1334 = vadd.xlane.f32.xlu1 %v1333_v12 }
 0x452   : > { %v4817_v13 = vpop.eup %4816 }
 0x453   : > { %v1336_v14 = vsel %vm1002_vm2, %v4817_v13, 0.0 }
 0x454   : > { %1337 = vadd.xlane.f32.xlu0 %v1336_v14  ;;  %v2075_v14 = vld [vmem:[%s5808_s7 + $0x10] sm:$0xff] }
 0x456   : > { %v4819_v15 = vpop.eup %4818 }
 0x457   : > { %v1339_v16 = vsel %vm1002_vm2, %v4819_v15, 0.0 }
 0x458   : > { %1340 = vadd.xlane.f32.xlu0 %v1339_v16 }
 0x483   : > { %1360 = vxpose.xlu1.b32.start.end [1/1] (short) (narrow) %v852_v56, 8 }
 0x485   : > { %1392 = vxpose.xlu0.b32.start.end [1/1] (short) (narrow) %v1352_v18, 8 }
 0x487   : > { %1456 = vxpose.xlu1.b32.start.end [1/1] (short) (narrow) %v1358_v19, 8 }
 0x489   : > { %1424 = vxpose.xlu0.b32.start.end [1/1] (short) (narrow) %v1355_v17, 8 }
 0x497   : > { %v1332_v20 = vpop.xlane.xlu0 %1331 }
 0x498   : > { %4820 = vrcp.f32 %v1332_v20 }
 0x4a2   : > { %v4821_v21 = vpop.eup %4820 }
 0x4a3   : > { %v1346_v22 = vmul.f32 %v4821_v21, %v4813_v60 }
 0x4a5   : > { %4501 = vmatpush3.xpose.msk.msra.mxu0 %vm1002_vm2, %v1346_v22 }
 0x4a6   : > { %4510 = vmatprep.subr.mxu0 %v5025_v1 }
 0x4dd   : > { %v1335_v23 = vpop.xlane.xlu1 %1334 }
 0x4de   : > { %4822 = vrcp.f32 %v1335_v23 }
 0x4e1   : > { %v1338_v26 = vpop.xlane.xlu0 %1337 }
 0x4e2   : > { %4824 = vrcp.f32 %v1338_v26 }
 0x4e5   : > { %v1341_v27 = vpop.xlane.xlu0 %1340 }
 0x4e6   : > { %4826 = vrcp.f32 %v1341_v27 }
 0x4e8   : > { %v4823_v24 = vpop.eup %4822 }
 0x4e9   : > { %v1347_v25 = vmul.f32 %v4823_v24, %v4815_v11 }
 0x4eb   : > { %4506 = vmatpush3.xpose.msk.msra.mxu1 %vm1002_vm2, %v1347_v25 }
 0x4ec   : > { %4515 = vmatprep.subr.mxu1 %v5025_v1  ;;  %v4825_v28 = vpop.eup %4824 }
 0x4ed   : > { %v1348_v30 = vmul.f32 %v4825_v28, %v4817_v13 }
 0x4f0   : > { %v4827_v29 = vpop.eup %4826 }
 0x4f1   : > { %v1349_v32 = vmul.f32 %v4827_v29, %v4819_v15  ;;  %v2076_v15 = vld [vmem:[%s5808_s7 + $0x18] sm:$0xff] }
 0x4f2   : > { %v4680_v20 = vpack.c.bf16 %v2076_v15, %v2075_v14 }
 0x503   : > { %v1376_v31 = vpop.trf.xlu1 }
 0x504   : > { %4503 = vmatmul.mubr.msk.f32.vlgmr.msra.gmra.mrb[4].mxu0 %vm1002_vm2, %v1376_v31 }
 0x505   : > { %4511 = vmatpush3.xpose.msk.msra.mxu0 %vm1002_vm2, %v1348_v30  ;;  %v1408_v33 = vpop.trf.xlu0  ;;  %4512 = vmatprep.mubr.msk.f32.mxu0 %vm5024_vm0, %v5025_v1 }
 0x506   : > { %4508 = vmatmul.mubr.msk.f32.vlgmr.msra.gmra.mrb[8].mxu1 %vm1002_vm2, %v1408_v33  ;;  %4676 = vmatprep.subr.bf16.mxu0 %v5023_v0 }
 0x507   : > { %4516 = vmatpush3.xpose.msk.msra.mxu1 %vm1002_vm2, %v1349_v32  ;;  %4517 = vmatprep.mubr.msk.f32.mxu1 %vm5024_vm0, %v5025_v1  ;;  %v1472_v34 = vpop.trf.xlu1 }
 0x508   : > { %4682 = vmatprep.subr.bf16.mxu1 %v5023_v0 }
 0x509   : > { %v1440_v36 = vpop.trf.xlu0 }
 0x50a   : > { %4513 = vmatmul.mubr.msk.f32.vlgmr.msra.gmra.mrb[6].mxu0 %vm1002_vm2, %v1440_v36  ;;  %4518 = vmatmul.mubr.msk.f32.vlgmr.msra.gmra.mrb[10].mxu1 %vm1002_vm2, %v1472_v34 }
 0x50b   : > { %4528 = vmatprep.mubr.msk.f32.mxu0 %vm5024_vm0, %v5025_v1  ;;  %4539 = vmatprep.mubr.msk.f32.mxu1 %vm5024_vm0, %v5025_v1 }
 0x50c   : > { %4678 = vmatpush3.bf16.msra.mxu0 %v4677_v47 }
 0x50d   : > { %4679 = vmatprep.subr.bf16.mxu0 %v5023_v0 }
 0x510   : > { %4681 = vmatpush3.bf16.msra.mxu0 %v4680_v20 }
 0x511   : > { %4688 = vmatprep.subr.bf16.mxu0 %v5023_v0 }
 0x5d7   : > { %v1560_v37 = vpop.f32.mrb[4].mxu0 }
 0x5d8   : > { %v4504_v38 = vpop.f32.mrb[5].mxu0  ;;  %1792 = vxpose.xlu0.b32.start.end [1/1] (short) (narrow) %v1560_v37, 8 }
 0x5d9   : > { %v1636_v39 = vpop.f32.mrb[8].mxu1 }
 0x5da   : > { %1824 = vxpose.xlu1.b32.start.end [1/1] (short) (narrow) %v1636_v39, 8  ;;  %v4509_v40 = vpop.f32.mrb[9].mxu1 }
 0x5dd   : > { %v1712_v41 = vpop.f32.mrb[6].mxu0  ;;  %v1788_v42 = vpop.f32.mrb[10].mxu1 }
 0x5de   : > { %1856 = vxpose.xlu0.b32.start.end [1/1] (short) (narrow) %v1712_v41, 8  ;;  %v4514_v43 = vpop.f32.mrb[7].mxu0  ;;  %1888 = vxpose.xlu1.b32.start.end [1/1] (short) (narrow) %v1788_v42, 8  ;;  %v4519_v44 = vpop.f32.mrb[11].mxu1 }
 0x658   : > { %v1808_v51 = vpop.trf.xlu0 }
 0x65a   : > { %v1840_v56 = vpop.trf.xlu1 }
 0x65e   : > { %v1872_v59 = vpop.trf.xlu0  ;;  %v1904_v60 = vpop.trf.xlu1 }
 0x65f   : > { %v1920_v61 = vcombine.low %v1808_v51, %v1872_v59  ;;  %v1921_v62 = vcombine.high %v1808_v51, %v1872_v59  ;;  %v1936_v63 = vcombine.low %v1840_v56, %v1904_v60  ;;  %v1937_v2 = vcombine.high %v1840_v56, %v1904_v60  ;;  %v2188_v60 = vld [vmem:[#allocation7] sm:$0xff] }
 0x661   : > { %v1928_v4 = vrot.slane %v1920_v61, %v5447_v58  ;;  %v1935_v5 = vrot.slane %v1921_v62, %v5447_v58  ;;  %v1944_v6 = vrot.slane %v1936_v63, %v5447_v58  ;;  %v1951_v7 = vrot.slane %v1937_v2, %v5447_v58  ;;  %v2189_v61 = vld [vmem:[#allocation7 + $0x8] sm:$0xff]  ;;  %v2190_v63 = vld [vmem:[#allocation7 + $0x10] sm:$0xff]  ;;  %v2191_v2 = vld [vmem:[#allocation7 + $0x18] sm:$0xff] }
 0x662   : > { %v4683_v62 = vpack.c.bf16 %v2189_v61, %v2188_v60  ;;  %v4312_v60 = vld [vmem:[%s5882_s5 + $0x28] sm:$0xff] }
 0x663   : > { %v1952_v10 = vcombine.low %v1928_v4, %v1944_v6  ;;  %v1953_v11 = vcombine.high %v1928_v4, %v1944_v6  ;;  %v1968_v12 = vcombine.low %v1935_v5, %v1951_v7  ;;  %v1969_v13 = vcombine.high %v1935_v5, %v1951_v7  ;;  %v2274_v5 = vld [vmem:[%s5812_s11 + $0x8] sm:$0xff]  ;;  %v2275_v6 = vld [vmem:[%s5812_s11 + $0x10] sm:$0xff] }
 0x664   : > { %4684 = vmatpush3.bf16.msra.mxu1 %v4683_v62  ;;  %v4686_v4 = vpack.c.bf16 %v2191_v2, %v2190_v63  ;;  %v4313_v2 = vld [vmem:[%s5882_s5 + $0x30] sm:$0xff] }
 0x665   : > { %v1960_v16 = vrot.slane %v1952_v10, %v5449_v3  ;;  %v1967_v17 = vrot.slane %v1953_v11, %v5449_v3  ;;  %v1976_v18 = vrot.slane %v1968_v12, %v5449_v3  ;;  %v1983_v19 = vrot.slane %v1969_v13, %v5449_v3  ;;  %4685 = vmatprep.subr.bf16.mxu1 %v5023_v0  ;;  %v2276_v10 = vld [vmem:[%s5812_s11 + $0x18] sm:$0xff]  ;;  %v2277_v12 = vld [vmem:[%s5812_s11 + $0x20] sm:$0xff]  ;;  %v2278_v13 = vld [vmem:[%s5812_s11 + $0x28] sm:$0xff] }
 0x666   : > { %v4692_v11 = vpack.c.bf16 %v2276_v10, %v2275_v6  ;;  %v4695_v14 = vpack.c.bf16 %v2278_v13, %v2277_v12 }
 0x667   : > { %v1988_v21 = vcombine.low %v1960_v16, %v1967_v17  ;;  %v4292_v22 = vcombine.high %v1960_v16, %v1967_v17  ;;  %v2004_v23 = vcombine.low %v1976_v18, %v1983_v19  ;;  %v4293_v24 = vcombine.high %v1976_v18, %v1983_v19  ;;  %v4296_v19 = vld [vmem:[%s5814_s13] ss:$0 sm:$0xff] }
 0x668   : > { %4687 = vmatpush3.bf16.msra.mxu1 %v4686_v4  ;;  %v4314_v4 = vld [vmem:[%s5882_s5 + $0x38] sm:$0xff] }
 0x669   : > { %v1995_v25 = vrot.slane %v1988_v21, %v5447_v58  ;;  %v2003_v26 = vrot.slane %v4292_v22, %v5447_v58  ;;  %v2011_v27 = vrot.slane %v2004_v23, %v5447_v58  ;;  %v2019_v28 = vrot.slane %v4293_v24, %v5447_v58  ;;  %4700 = vmatprep.subr.bf16.mxu1 %v5023_v0  ;;  %v4297_v21 = vld [vmem:[%s5815_s14] ss:$0 sm:$0xff]  ;;  %v2279_v24 = vld [vmem:[%s5812_s11 + $0x30] sm:$0xff] }
 0x66b   : > { %v2021_v29 = vcombine.high %v1995_v25, %v2003_v26  ;;  %v2037_v30 = vcombine.high %v2011_v27, %v2019_v28  ;;  %v2020_v31 = vcombine.low %v1995_v25, %v2003_v26  ;;  %v2036_v32 = vcombine.low %v2011_v27, %v2019_v28  ;;  %v2280_v25 = vld [vmem:[%s5812_s11 + $0x38] sm:$0xff]  ;;  %v4298_v27 = vld [vmem:[%s5885_s29] ss:$0 sm:$0xff] }
 0x66c   : > { %v4698_v26 = vpack.c.bf16 %v2280_v25, %v2279_v24 }
 0x66d   : > { %v2035_v33 = vrot.slane %v2021_v29, %v5449_v3  ;;  %v2051_v34 = vrot.slane %v2037_v30, %v5449_v3  ;;  %v2028_v36 = vrot.slane %v2020_v31, %v5449_v3  ;;  %v2044_v37 = vrot.slane %v2036_v32, %v5449_v3  ;;  %v4300_v32 = vld [vmem:[%s5886_s20] ss:$0 sm:$0xff]  ;;  %s5892_s20 = smov 8  }
 0x66f   : > { %v2054_v38 = vcombine.low %v2035_v33, %v2051_v34  ;;  %v2053_v39 = vcombine.high %v2028_v36, %v2044_v37  ;;  %v2052_v40 = vcombine.low %v2028_v36, %v2044_v37  ;;  %v2055_v41 = vcombine.high %v2035_v33, %v2051_v34 }
 0x671   : > { %2061 = vrot.lane.b32.xlu1 %v2054_v38, %s5842_s2  ;;  %2057 = vrot.lane.b32.xlu0 %v2053_v39, %s5841_s27  ;;  %s5890_s27 = smov 96  }
 0x675   : > { %2065 = vrot.lane.b32.xlu1 %v2055_v41, %s5840_s22  ;;  %s679_s22 = scalar_lea.vmem [#allocation8], %s5304_s23  ;;  %s4946_s23 = sshll.u32 %s5035_s1, 4  ;;  %s4947_s23 = int_to_ptr.vmem [resolvable:$false] %s4946_s23 }
 0x676   : > { %s4151_s24 = sshll.u32 %s679_s22, 4  ;;  %s5758_s24 = int_to_ptr.vmem [resolvable:$true] %s4151_s24 }
 0x677   : > { %p4949_p2 = scmp.lt.s32.totalorder %s5758_s24, %s4947_s23 }
 0x6e3   : > { %v2062_v42 = vpop.permute.xlu1 %2061  ;;  %v2058_v43 = vpop.permute.xlu0 %2057 }
 0x6e4   : > { %v2068_v44 = vsel %vm1002_vm2, %v2052_v40, %v2058_v43 }
 0x6e5   : > { %v2070_v46 = vsel %vm2069_vm3, %v2068_v44, %v2062_v42  ;;  %v4304_v44 = vld [vmem:[%s5880_s17 + $0x20] sm:$0xff] }
 0x6e7   : > { %v2066_v45 = vpop.permute.xlu1 %2065 }
 0x6e8   : > { %v2072_v47 = vsel %vm2071_vm4, %v2070_v46, %v2066_v45  ;;  %v4305_v45 = vld [vmem:[%s5880_s17 + $0x28] sm:$0xff] }
 0x6e9   : > { %4529 = vmatmul.mubr.msk.f32.vlgmr.msra.gmra.mrb[8].mxu0 %vm697_vm1, %v2072_v47  ;;  %v4701_v46 = vpack.c.bf16 %v4305_v45, %v4304_v44  ;;  %v4306_v47 = vld [vmem:[%s5880_s17 + $0x30] sm:$0xff]  ;;  %v4316_v44 = vld [vmem:[%s5884_s6 + $0x1] ss:$0 sm:$0xff] }
 0x6ea   : > { %4558 = vmatprep.mubr.msk.f32.mxu0 %vm5024_vm0, %v5025_v1 }
 0x7bc   : > { %v2153_v49 = vpop.f32.mrb[8].mxu0 }
 0x7bd   : > { %v2154_v50 = vadd.f32 %v4294_v48, %v2153_v49  ;;  %v4530_v51 = vpop.f32.mrb[9].mxu0  ;;  %v4307_v48 = vld [vmem:[%s5880_s17 + $0x38] sm:$0xff] }
 0x7be   : > { %v4704_v49 = vpack.c.bf16 %v4307_v48, %v4306_v47 }
 0x7bf   : > { %v2157_v52 = vadd.f32 %v2154_v50, %v5340_v8  ;;  %v2273_v8 = vld [vmem:[%s5812_s11] sm:$0xff] }
 0x7c0   : > { %v4689_v7 = vpack.c.bf16 %v2274_v5, %v2273_v8  ;;  %v4710_v8 = vpack.c.bf16 %v4314_v4, %v4313_v2 }
 0x7c1   : > { %v2160_v53 = vsel %vm697_vm1, %v2157_v52, 0.0 }
 0x7c2   : > { %2161 = vadd.xlane.f32.xlu1 %v2160_v53  ;;  %4690 = vmatpush3.bf16.msra.mxu0 %v4689_v7 }
 0x7c3   : > { %4691 = vmatprep.subr.bf16.mxu0 %v5023_v0 }
 0x7c6   : > { %4693 = vmatpush3.bf16.msra.mxu0 %v4692_v11 }
 0x7c7   : > { %4694 = vmatprep.subr.bf16.mxu0 %v5023_v0 }
 0x7ca   : > { %4696 = vmatpush3.bf16.msra.mxu0 %v4695_v14 }
 0x7cb   : > { %4697 = vmatprep.subr.bf16.mxu0 %v5023_v0 }
 0x7ce   : > { %4699 = vmatpush3.bf16.msra.mxu0 %v4698_v26 }
 0x7cf   : > { %4583 = vmatprep.subr.mxu0 %v5025_v1 }
 0x84f   : > { %v2162_v54 = vpop.xlane.xlu1 %2161 }
 0x850   : > { %v2164_v55 = vmul.f32 0.03125, %v2162_v54  ;;  %v4302_v54 = vld [vmem:[%s5888_s16] ss:$0 sm:$0xff] }
 0x852   : > { %v2165_v56 = vsub.f32 %v2157_v52, %v2164_v55 }
 0x854   : > { %v2166_v57 = vmul.f32 %v2165_v56, %v2165_v56 }
 0x856   : > { %v2167_v59 = vsel %vm697_vm1, %v2166_v57, 0.0 }
 0x857   : > { %2168 = vadd.xlane.f32.xlu0 %v2167_v59  ;;  %v4311_v59 = vld [vmem:[%s5882_s5 + $0x20] sm:$0xff]  ;;  %s5897_s5 = sld [smem:[#allocation33_spill]] }
 0x858   : > { %v4707_v62 = vpack.c.bf16 %v4312_v60, %v4311_v59 }
 0x85d   : > { %s5756_s6 = scalar_lea.hbm %s5897_s5, %s4365_s3 }
 0x8e4   : > { %v2169_v15 = vpop.xlane.xlu0 %2168 }
 0x8e5   : > { %v2170_v16 = vmul.f32 0.03125, %v2169_v15 }
 0x8e7   : > { %v2171_v17 = vadd.f32 1e-05, %v2170_v16 }
 0x8e9   : > { %4828 = vrsqrt.f32 %v2171_v17 }
 0x8f3   : > { %v4829_v18 = vpop.eup %4828 }
 0x8f4   : > { %v2173_v20 = vmul.f32 %v4829_v18, %v2165_v56  ;;  %v4303_v56 = vld [vmem:[%s5889_s26] ss:$0 sm:$0xff] }
 0x8f6   : > { %v2180_v22 = vmul.f32 %v4296_v19, %v2173_v20 }
 0x8f8   : > { %v2187_v23 = vadd.f32 %v4297_v21, %v2180_v22 }
 0x8fa   : > { %4540 = vmatmul.mubr.msk.f32.vlgmr.msra.gmra.mrb[12].mxu1 %vm697_vm1, %v2187_v23 }
 0x8fb   : > { %4569 = vmatprep.mubr.msk.f32.mxu1 %vm5024_vm0, %v5025_v1  ;;  %4702 = vmatpush3.bf16.msra.mxu1 %v4701_v46 }
 0x8fc   : > { %4703 = vmatprep.subr.bf16.mxu1 %v5023_v0 }
 0x8ff   : > { %4705 = vmatpush3.bf16.msra.mxu1 %v4704_v49 }
 0x900   : > { %4706 = vmatprep.subr.bf16.mxu1 %v5023_v0 }
 0x9cd   : > { %v2268_v28 = vpop.f32.mrb[12].mxu1 }
 0x9ce   : > { %v2269_v29 = vadd.f32 %v4298_v27, %v2268_v28  ;;  %v4541_v30 = vpop.f32.mrb[13].mxu1 }
 0x9d0   : > { %v2272_v31 = vmax.f32 %v2269_v29, 0.0 }
 0x9d2   : > { %4559 = vmatmul.mubr.msk.f32.vlgmr.msra.gmra.mrb[10].mxu0 %vm2288_vm5, %v2272_v31 }
 0x9d3   : > { %4585 = vmatprep.mubr.msk.f32.mxu0 %vm5024_vm0, %v5025_v1 }
 0xaa5   : > { %v2358_v33 = vpop.f32.mrb[10].mxu0 }
 0xaa6   : > { %v2359_v34 = vadd.f32 %v4300_v32, %v2358_v33  ;;  %v4560_v36 = vpop.f32.mrb[11].mxu0 }
 0xaa8   : > { %v2362_v37 = vadd.f32 %v2359_v34, %v2187_v23 }
 0xaaa   : > { %v2365_v38 = vsel %vm697_vm1, %v2362_v37, 0.0 }
 0xaab   : > { %2366 = vadd.xlane.f32.xlu0 %v2365_v38 }
 0xb38   : > { %v2367_v39 = vpop.xlane.xlu0 %2366 }
 0xb39   : > { %v2368_v40 = vmul.f32 0.03125, %v2367_v39 }
 0xb3b   : > { %v2369_v41 = vsub.f32 %v2362_v37, %v2368_v40 }
 0xb3d   : > { %v2370_v42 = vmul.f32 %v2369_v41, %v2369_v41 }
 0xb3f   : > { %v2371_v43 = vsel %vm697_vm1, %v2370_v42, 0.0 }
 0xb40   : > { %2372 = vadd.xlane.f32.xlu1 %v2371_v43 }
 0xbcd   : > { %v2373_v50 = vpop.xlane.xlu1 %2372 }
 0xbce   : > { %v2374_v51 = vmul.f32 0.03125, %v2373_v50 }
 0xbd0   : > { %v2375_v52 = vadd.f32 1e-05, %v2374_v51 }
 0xbd2   : > { %4830 = vrsqrt.f32 %v2375_v52 }
 0xbdc   : > { %v4831_v53 = vpop.eup %4830 }
 0xbdd   : > { %v2377_v55 = vmul.f32 %v4831_v53, %v2369_v41 }
 0xbdf   : > { %v2384_v57 = vmul.f32 %v4302_v54, %v2377_v55 }
 0xbe1   : > { %v5565_v61 = vadd.f32 %v4303_v56, %v2384_v57 }
 0xbe3   : > { %v2392_v63 = vadd.f32 %v5565_v61, %v5342_v9  ;;  %v4309_v9 = vld [vmem:[%s5881_s4 + $0x1] ss:$0 sm:$0xff] }
 0xbe5   : > { %4570 = vmatmul.mubr.msk.f32.vlgmr.msra.gmra.mrb[14].mxu1 %vm697_vm1, %v2392_v63 }
 0xbe6   : > { %4708 = vmatpush3.bf16.msra.mxu1 %v4707_v62  ;;  %4580 = vmatprep.mubr.msk.f32.mxu1 %vm5024_vm0, %v5025_v1 }
 0xbe7   : > { %4709 = vmatprep.subr.bf16.mxu1 %v5023_v0 }
 0xbea   : > { %4711 = vmatpush3.bf16.msra.mxu1 %v4710_v8 }
 0xbeb   : > { %4588 = vmatprep.subr.mxu1 %v5025_v1 }
 0xbed   : > { %4581 = vmatmul.mubr.msk.f32.vlgmr.msra.gmra.mrb[16].mxu1 %vm697_vm1, %v5565_v61 }
 0xbee   : > { %4590 = vmatprep.mubr.msk.f32.mxu1 %vm5024_vm0, %v5025_v1 }
 0xcb8   : > { %v2475_v5 = vpop.f32.mrb[14].mxu1 }
 0xcb9   : > { %v2476_v6 = vadd.f32 %v4309_v9, %v2475_v5  ;;  %v4571_v7 = vpop.f32.mrb[15].mxu1 }
 0xcbb   : > { %2568 = vrot.lane.b32.xlu1 %v2476_v6, %s5029_s19  ;;  %2566 = vrot.lane.b32.xlu0 %v2476_v6, %s5027_s28 }
 0xcbf   : > { %2570 = vrot.lane.b32.xlu1 %v2476_v6, %s5026_s0  ;;  %2572 = vrot.lane.b32.xlu0 %v2476_v6, %s5890_s27 }
 0xcc0   : > { %v2561_v10 = vpop.f32.mrb[16].mxu1 }
 0xcc1   : > { %v4582_v11 = vpop.f32.mrb[17].mxu1  ;;  %v2562_v45 = vadd.f32 %v4316_v44, %v2561_v10 }
 0xd2d   : > { %v2569_v12 = vpop.permute.xlu1 %2568  ;;  %v2567_v13 = vpop.permute.xlu0 %2566 }
 0xd2e   : > { %2576 = vrot.lane.b32.xlu0 %v2569_v12, %s5890_s27  ;;  %2574 = vrot.lane.b32.xlu1 %v2567_v13, %s5890_s27 }
 0xd31   : > { %v2571_v14 = vpop.permute.xlu1 %2570  ;;  %v2573_v15 = vpop.permute.xlu0 %2572 }
 0xd32   : > { %2578 = vrot.lane.b32.xlu1 %v2571_v14, %s5890_s27  ;;  %s5891_s27 = smov 16  }
 0xd4c   : > { %2584 = vxpose.xlu0.b32.start.end [1/1] (short) (narrow) %v2573_v15, 8 }
 0xda0   : > { %v2575_v16 = vpop.permute.xlu1 %2574  ;;  %v2577_v17 = vpop.permute.xlu0 %2576 }
 0xda1   : > { %2616 = vxpose.xlu1.b32.start.end [1/1] (short) (narrow) %v2575_v16, 8  ;;  %2648 = vxpose.xlu0.b32.start.end [1/1] (short) (narrow) %v2577_v17, 8 }
 0xda4   : > { %v2579_v18 = vpop.permute.xlu1 %2578 }
 0xda5   : > { %2680 = vxpose.xlu0.b32.start.end [1/1] (short) (narrow) %v2579_v18, 8 }
 0xdcc   : > { %v2600_v19 = vpop.trf.xlu0 }
 0xdcd   : > { %4584 = vmatpush3.msra.mxu0 %v2600_v19 }
 0xdce   : > { %4586 = vmatmul.mubr.msk.f32.vlgmr.msra.gmra.mrb[12].mxu0 %vm1002_vm2, %v2476_v6  ;;  %4593 = vmatprep.subr.mxu0 %v5025_v1 }
 0xdcf   : > { %4595 = vmatprep.mubr.msk.f32.mxu0 %vm5024_vm0, %v5025_v1 }
 0xe21   : > { %v2632_v20 = vpop.trf.xlu1  ;;  %v2664_v21 = vpop.trf.xlu0 }
 0xe22   : > { %4589 = vmatpush3.msra.mxu1 %v2632_v20  ;;  %4594 = vmatpush3.msra.mxu0 %v2664_v21 }
 0xe23   : > { %4591 = vmatmul.mubr.msk.f32.vlgmr.msra.gmra.mrb[18].mxu1 %vm1002_vm2, %v2567_v13  ;;  %4596 = vmatmul.mubr.msk.f32.vlgmr.msra.gmra.mrb[14].mxu0 %vm1002_vm2, %v2569_v12 }
 0xe24   : > { %4598 = vmatprep.subr.mxu1 %v5025_v1  ;;  %4600 = vmatprep.mubr.msk.f32.mxu1 %vm5024_vm0, %v5025_v1 }
 0xe25   : > { %v2696_v22 = vpop.trf.xlu0  ;;  %4603 = vmatprep.subr.mxu0 %v5025_v1  ;;  %4605 = vmatprep.mubr.msk.f32.mxu0 %vm5024_vm0, %v5025_v1 }
 0xe26   : > { %4599 = vmatpush3.msra.mxu1 %v2696_v22 }
 0xe27   : > { %4601 = vmatmul.mubr.msk.f32.vlgmr.msra.gmra.mrb[20].mxu1 %vm1002_vm2, %v2571_v14  ;;  %4608 = vmatprep.subr.mxu1 %v5025_v1 }
 0xe28   : > { %4610 = vmatprep.mubr.msk.f32.mxu1 %vm5024_vm0, %v5025_v1 }
 0xea1   : > { %v2780_v23 = vpop.f32.mrb[12].mxu0 }
 0xea2   : > { %v3000_v24 = vmul.f32 0.35355338, %v2780_v23  ;;  %v4587_v25 = vpop.f32.mrb[13].mxu0 }
 0xea4   : > { %v3011_v26 = vadd.f32 %v5400_v35, %v3000_v24 }
 0xea6   : > { %v3015_v27 = vsel %vm1002_vm2, %v3011_v26, -inf }
 0xea7   : > { %3016 = vmax.xlane.f32.xlu0 %v3015_v27 }
 0xef6   : > { %v2852_v28 = vpop.f32.mrb[18].mxu1  ;;  %v2924_v29 = vpop.f32.mrb[14].mxu0 }
 0xef7   : > { %v3001_v30 = vmul.f32 0.35355338, %v2852_v28  ;;  %v3002_v31 = vmul.f32 0.35355338, %v2924_v29  ;;  %v4592_v32 = vpop.f32.mrb[19].mxu1  ;;  %v4597_v33 = vpop.f32.mrb[15].mxu0 }
 0xef8   : > { %v4333_v33 = vld [vmem:[%s5808_s7 + $0x20] sm:$0xff] }
 0xef9   : > { %v3012_v34 = vadd.f32 %v5400_v35, %v3001_v30  ;;  %v3013_v40 = vadd.f32 %v5400_v35, %v3002_v31 }
 0xefa   : > { %v2996_v36 = vpop.f32.mrb[20].mxu1 }
 0xefb   : > { %v3003_v37 = vmul.f32 0.35355338, %v2996_v36  ;;  %v4602_v38 = vpop.f32.mrb[21].mxu1  ;;  %v3018_v39 = vsel %vm1002_vm2, %v3012_v34, -inf  ;;  %v3021_v42 = vsel %vm1002_vm2, %v3013_v40, -inf }
 0xefc   : > { %3019 = vmax.xlane.f32.xlu1 %v3018_v39 }
 0xefd   : > { %v3014_v41 = vadd.f32 %v5400_v35, %v3003_v37 }
 0xeff   : > { %v3024_v43 = vsel %vm1002_vm2, %v3014_v41, -inf }
 0xf00   : > { %3022 = vmax.xlane.f32.xlu1 %v3021_v42  ;;  %3025 = vmax.xlane.f32.xlu0 %v3024_v43 }
 0xf11   : > { %3060 = vrot.lane.b32.xlu1 %v2562_v45, %s5027_s28 }
 0xf15   : > { %3066 = vrot.lane.b32.xlu1 %v2562_v45, %s5026_s0  ;;  %s5895_s0 = sld [smem:[#allocation31_spill]] }
 0xf16   : > { %3063 = vrot.lane.b32.xlu0 %v2562_v45, %s5029_s19 }
 0xf34   : > { %v3017_v46 = vpop.xlane.xlu0 %3016 }
 0xf35   : > { %v3027_v47 = vsub.f32 %v3011_v26, %v3017_v46 }
 0xf37   : > { %v3031_v35 = vmul.f32 1.442695, %v3027_v47 }
 0xf39   : > { %4832 = vpow2.f32 %v3031_v35 }
 0xf43   : > { %v4833_v48 = vpop.eup %4832 }
 0xf44   : > { %v3039_v49 = vsel %vm1002_vm2, %v4833_v48, 0.0 }
 0xf45   : > { %3040 = vadd.xlane.f32.xlu1 %v3039_v49 }
 0xf89   : > { %v3020_v50 = vpop.xlane.xlu1 %3019 }
 0xf8a   : > { %v3028_v51 = vsub.f32 %v3012_v34, %v3020_v50  ;;  %v4334_v34 = vld [vmem:[%s5808_s7 + $0x28] sm:$0xff] }
 0xf8b   : > { %v4713_v36 = vpack.c.bf16 %v4334_v34, %v4333_v33 }
 0xf8c   : > { %v3033_v52 = vmul.f32 1.442695, %v3028_v51 }
 0xf8d   : > { %v3023_v53 = vpop.xlane.xlu1 %3022  ;;  %v3026_v54 = vpop.xlane.xlu0 %3025 }
 0xf8e   : > { %4834 = vpow2.f32 %v3033_v52  ;;  %v3029_v55 = vsub.f32 %v3013_v40, %v3023_v53  ;;  %v3030_v56 = vsub.f32 %v3014_v41, %v3026_v54  ;;  %v4335_v52 = vld [vmem:[%s5808_s7 + $0x30] sm:$0xff]  ;;  %v4336_v53 = vld [vmem:[%s5808_s7 + $0x38] sm:$0xff] }
 0xf90   : > { %v3035_v57 = vmul.f32 1.442695, %v3029_v55  ;;  %v3037_v59 = vmul.f32 1.442695, %v3030_v56 }
 0xf91   : > { %v3061_v9 = vpop.permute.xlu1 %3060  ;;  %v3064_v5 = vpop.permute.xlu0 %3063 }
 0xf92   : > { %4836 = vpow2.f32 %v3035_v57 }
 0xf93   : > { %4838 = vpow2.f32 %v3037_v59  ;;  %v4716_v59 = vpack.c.bf16 %v4336_v53, %v4335_v52  ;;  %v4342_v52 = vld [vmem:[%s5814_s13 + $0x1] ss:$0 sm:$0xff] }
 0xf95   : > { %v3067_v6 = vpop.permute.xlu1 %3066 }
 0xf98   : > { %v4835_v60 = vpop.eup %4834 }
 0xf99   : > { %v3042_v62 = vsel %vm1002_vm2, %v4835_v60, 0.0 }
 0xf9a   : > { %3043 = vadd.xlane.f32.xlu0 %v3042_v62 }
 0xf9c   : > { %v4837_v63 = vpop.eup %4836 }
 0xf9d   : > { %v4839_v2 = vpop.eup %4838  ;;  %v3045_v4 = vsel %vm1002_vm2, %v4837_v63, 0.0 }
 0xf9e   : > { %3046 = vadd.xlane.f32.xlu0 %v3045_v4  ;;  %v3048_v8 = vsel %vm1002_vm2, %v4839_v2, 0.0 }
 0xf9f   : > { %3049 = vadd.xlane.f32.xlu1 %v3048_v8 }
 0xfcb   : > { %3069 = vxpose.xlu0.b32.start.end [1/1] (short) (narrow) %v2562_v45, 8 }
 0xfcf   : > { %3133 = vxpose.xlu0.b32.start.end [1/1] (short) (narrow) %v3064_v5, 8 }
 0xfd2   : > { %3101 = vxpose.xlu1.b32.start.end [1/1] (short) (narrow) %v3061_v9, 8  ;;  %v3041_v7 = vpop.xlane.xlu1 %3040 }
 0xfd3   : > { %4840 = vrcp.f32 %v3041_v7  ;;  %3165 = vxpose.xlu0.b32.start.end [1/1] (short) (narrow) %v3067_v6, 8 }
 0xfdd   : > { %v4841_v10 = vpop.eup %4840 }
 0xfde   : > { %v3055_v11 = vmul.f32 %v4841_v10, %v4833_v48 }
 0xfe0   : > { %4604 = vmatpush3.xpose.msk.msra.mxu0 %vm1002_vm2, %v3055_v11 }
 0xfe1   : > { %4613 = vmatprep.subr.mxu0 %v5025_v1 }
0x1027   : > { %v3044_v12 = vpop.xlane.xlu0 %3043 }
0x1028   : > { %4842 = vrcp.f32 %v3044_v12 }
0x102b   : > { %v3047_v15 = vpop.xlane.xlu0 %3046 }
0x102c   : > { %4844 = vrcp.f32 %v3047_v15  ;;  %v3050_v16 = vpop.xlane.xlu1 %3049 }
0x102d   : > { %4846 = vrcp.f32 %v3050_v16 }
0x1032   : > { %v4843_v13 = vpop.eup %4842 }
0x1033   : > { %v3056_v14 = vmul.f32 %v4843_v13, %v4835_v60 }
0x1035   : > { %4609 = vmatpush3.xpose.msk.msra.mxu1 %vm1002_vm2, %v3056_v14 }
0x1036   : > { %4618 = vmatprep.subr.mxu1 %v5025_v1  ;;  %v4845_v17 = vpop.eup %4844 }
0x1037   : > { %v3057_v18 = vmul.f32 %v4845_v17, %v4837_v63  ;;  %v4847_v20 = vpop.eup %4846 }
0x1038   : > { %v3058_v22 = vmul.f32 %v4847_v20, %v4839_v2 }
0x104b   : > { %v3085_v19 = vpop.trf.xlu0 }
0x104c   : > { %4606 = vmatmul.mubr.msk.f32.vlgmr.msra.gmra.mrb[16].mxu0 %vm1002_vm2, %v3085_v19 }
0x104d   : > { %4614 = vmatpush3.xpose.msk.msra.mxu0 %vm1002_vm2, %v3057_v18  ;;  %4615 = vmatprep.mubr.msk.f32.mxu0 %vm5024_vm0, %v5025_v1 }
0x104e   : > { %4712 = vmatprep.subr.bf16.mxu0 %v5023_v0 }
0x104f   : > { %v3149_v21 = vpop.trf.xlu0 }
0x1050   : > { %4616 = vmatmul.mubr.msk.f32.vlgmr.msra.gmra.mrb[18].mxu0 %vm1002_vm2, %v3149_v21 }
0x1051   : > { %4631 = vmatprep.mubr.msk.f32.mxu0 %vm5024_vm0, %v5025_v1  ;;  %4714 = vmatpush3.bf16.msra.mxu0 %v4713_v36  ;;  %v3900_v36 = vld [vmem:[#allocation7 + $0x28] sm:$0xff] }
0x1052   : > { %v3117_v23 = vpop.trf.xlu1  ;;  %4715 = vmatprep.subr.bf16.mxu0 %v5023_v0 }
0x1053   : > { %4611 = vmatmul.mubr.msk.f32.vlgmr.msra.gmra.mrb[22].mxu1 %vm1002_vm2, %v3117_v23  ;;  %v3181_v24 = vpop.trf.xlu0 }
0x1054   : > { %4619 = vmatpush3.xpose.msk.msra.mxu1 %vm1002_vm2, %v3058_v22  ;;  %4620 = vmatprep.mubr.msk.f32.mxu1 %vm5024_vm0, %v5025_v1 }
0x1055   : > { %4718 = vmatprep.subr.bf16.mxu1 %v5023_v0  ;;  %4717 = vmatpush3.bf16.msra.mxu0 %v4716_v59 }
0x1056   : > { %4724 = vmatprep.subr.bf16.mxu0 %v5023_v0 }
0x1057   : > { %4621 = vmatmul.mubr.msk.f32.vlgmr.msra.gmra.mrb[24].mxu1 %vm1002_vm2, %v3181_v24 }
0x1058   : > { %4642 = vmatprep.mubr.msk.f32.mxu1 %vm5024_vm0, %v5025_v1 }
0x111f   : > { %v3269_v25 = vpop.f32.mrb[16].mxu0 }
0x1120   : > { %v4607_v26 = vpop.f32.mrb[17].mxu0  ;;  %3501 = vxpose.xlu1.b32.start.end [1/1] (short) (narrow) %v3269_v25, 8 }
0x1123   : > { %v3421_v27 = vpop.f32.mrb[18].mxu0 }
0x1124   : > { %v4617_v28 = vpop.f32.mrb[19].mxu0  ;;  %3565 = vxpose.xlu1.b32.start.end [1/1] (short) (narrow) %v3421_v27, 8 }
0x1126   : > { %v3345_v29 = vpop.f32.mrb[22].mxu1 }
0x1127   : > { %3533 = vxpose.xlu0.b32.start.end [1/1] (short) (narrow) %v3345_v29, 8  ;;  %v4612_v30 = vpop.f32.mrb[23].mxu1 }
0x112a   : > { %v3497_v31 = vpop.f32.mrb[24].mxu1 }
0x112b   : > { %3597 = vxpose.xlu0.b32.start.end [1/1] (short) (narrow) %v3497_v31, 8  ;;  %v4622_v32 = vpop.f32.mrb[25].mxu1 }
0x11a0   : > { %v3517_v37 = vpop.trf.xlu1 }
0x11a4   : > { %v3581_v39 = vpop.trf.xlu1 }
0x11a5   : > { %v3629_v40 = vcombine.low %v3517_v37, %v3581_v39  ;;  %v3630_v41 = vcombine.high %v3517_v37, %v3581_v39  ;;  %v3902_v39 = vld [vmem:[#allocation7 + $0x38] sm:$0xff] }
0x11a7   : > { %v3549_v38 = vpop.trf.xlu0  ;;  %v3637_v45 = vrot.slane %v3629_v40, %v5447_v58  ;;  %v3644_v46 = vrot.slane %v3630_v41, %v5447_v58  ;;  %v4348_v41 = vld [vmem:[%s5812_s11 + $0x48] sm:$0xff] }
0x11ab   : > { %v3613_v42 = vpop.trf.xlu0 }
0x11ac   : > { %v3645_v43 = vcombine.low %v3549_v38, %v3613_v42  ;;  %v3646_v44 = vcombine.high %v3549_v38, %v3613_v42  ;;  %v3901_v38 = vld [vmem:[#allocation7 + $0x30] sm:$0xff] }
0x11ad   : > { %v4722_v40 = vpack.c.bf16 %v3902_v39, %v3901_v38  ;;  %v4349_v42 = vld [vmem:[%s5812_s11 + $0x50] sm:$0xff] }
0x11ae   : > { %v3653_v47 = vrot.slane %v3645_v43, %v5447_v58  ;;  %v3660_v35 = vrot.slane %v3646_v44, %v5447_v58  ;;  %v4350_v44 = vld [vmem:[%s5812_s11 + $0x58] sm:$0xff] }
0x11b0   : > { %v3661_v48 = vcombine.low %v3637_v45, %v3653_v47  ;;  %v3662_v49 = vcombine.high %v3637_v45, %v3653_v47  ;;  %v3677_v50 = vcombine.low %v3644_v46, %v3660_v35  ;;  %v3678_v51 = vcombine.high %v3644_v46, %v3660_v35  ;;  %v4351_v46 = vld [vmem:[%s5812_s11 + $0x60] sm:$0xff]  ;;  %v4352_v47 = vld [vmem:[%s5812_s11 + $0x68] sm:$0xff] }
0x11b1   : > { %v4728_v45 = vpack.c.bf16 %v4350_v44, %v4349_v42  ;;  %v4731_v35 = vpack.c.bf16 %v4352_v47, %v4351_v46 }
0x11b2   : > { %v3669_v54 = vrot.slane %v3661_v48, %v5449_v3  ;;  %v3676_v55 = vrot.slane %v3662_v49, %v5449_v3  ;;  %v3685_v56 = vrot.slane %v3677_v50, %v5449_v3  ;;  %v3692_v57 = vrot.slane %v3678_v51, %v5449_v3 }
0x11b4   : > { %v3697_v60 = vcombine.low %v3669_v54, %v3676_v55  ;;  %v4331_v62 = vcombine.high %v3669_v54, %v3676_v55  ;;  %v3713_v63 = vcombine.low %v3685_v56, %v3692_v57  ;;  %v4332_v2 = vcombine.high %v3685_v56, %v3692_v57  ;;  %v4343_v54 = vld [vmem:[%s5815_s14 + $0x1] ss:$0 sm:$0xff]  ;;  %v4354_v57 = vld [vmem:[%s5812_s11 + $0x78] sm:$0xff] }
0x11b6   : > { %v3704_v4 = vrot.slane %v3697_v60, %v5447_v58  ;;  %v3712_v8 = vrot.slane %v4331_v62, %v5447_v58  ;;  %v3720_v9 = vrot.slane %v3713_v63, %v5447_v58  ;;  %v3728_v5 = vrot.slane %v4332_v2, %v5447_v58  ;;  %v4345_v60 = vld [vmem:[%s5885_s29 + $0x1] ss:$0 sm:$0xff] }
0x11b8   : > { %v3730_v6 = vcombine.high %v3704_v4, %v3712_v8  ;;  %v3746_v7 = vcombine.high %v3720_v9, %v3728_v5  ;;  %v3729_v10 = vcombine.low %v3704_v4, %v3712_v8  ;;  %v3745_v11 = vcombine.low %v3720_v9, %v3728_v5  ;;  %v4356_v8 = vld [vmem:[%s5887_s25 + $0x1] ss:$0 sm:$0xff] }
0x11ba   : > { %v3744_v12 = vrot.slane %v3730_v6, %v5449_v3  ;;  %v3760_v13 = vrot.slane %v3746_v7, %v5449_v3  ;;  %v3737_v14 = vrot.slane %v3729_v10, %v5449_v3  ;;  %v3753_v15 = vrot.slane %v3745_v11, %v5449_v3  ;;  %v4338_v3 = vld [vmem:[%s5809_s8 + $0x1] ss:$0 sm:$0xff] }
0x11bc   : > { %v3763_v16 = vcombine.low %v3744_v12, %v3760_v13  ;;  %v3762_v17 = vcombine.high %v3737_v14, %v3753_v15  ;;  %v3761_v18 = vcombine.low %v3737_v14, %v3753_v15  ;;  %v3764_v58 = vcombine.high %v3744_v12, %v3760_v13 }
0x11be   : > { %3770 = vrot.lane.b32.xlu0 %v3763_v16, %s5891_s27  ;;  %3766 = vrot.lane.b32.xlu1 %v3762_v17, %s5892_s20  ;;  %s5894_s27 = sld [smem:[#allocation18_spill]]  ;;  %s4138_s20 = scalar_lea.sflag [#allocation4], %s5301_s12 }
0x11c2   : > { %3774 = vrot.lane.b32.xlu1 %v3764_v58, %s5893_s10  ;;  %s4942_s10 = scalar_lea.vmem %s5758_s24, 128 }
0x11c3   : > { %p4943_p13 = scmp.ne.s32.totalorder %s5758_s24, %s4942_s10 }
0x11c4   : > { %p5898_p3 = scmp.ne.s32.totalorder %s5894_s27, 0 }
0x11c6   : > { %p4944_p7 = pnand %p4943_p13, %p5898_p3 }
0x11c8   : > { %p4945_p9 = pneg %p4944_p7 }
0x1230   : > { %v3767_v19 = vpop.permute.xlu1 %3766  ;;  %v3771_v20 = vpop.permute.xlu0 %3770 }
0x1231   : > { %v3777_v21 = vsel %vm1002_vm2, %v3761_v18, %v3767_v19  ;;  %v4360_v19 = vld [vmem:[%s5888_s16 + $0x1] ss:$0 sm:$0xff] }
0x1232   : > { %v3778_v23 = vsel %vm2069_vm3, %v3777_v21, %v3771_v20  ;;  %v4361_v21 = vld [vmem:[%s5889_s26 + $0x1] ss:$0 sm:$0xff] }
0x1234   : > { %v3775_v22 = vpop.permute.xlu1 %3774 }
0x1235   : > { %v3779_v24 = vsel %vm2071_vm4, %v3778_v23, %v3775_v22 }
0x1236   : > { %4632 = vmatmul.mubr.msk.f32.vlgmr.msra.gmra.mrb[20].mxu0 %vm697_vm1, %v3779_v24 }
0x1237   : > { %4661 = vmatprep.mubr.msk.f32.mxu0 %vm5024_vm0, %v5025_v1  ;;  %v3899_v1 = vld [vmem:[#allocation7 + $0x20] sm:$0xff] }
0x1238   : > { %v4719_v37 = vpack.c.bf16 %v3900_v36, %v3899_v1  ;;  %v4363_v1 = vld [vmem:[%s5896_s9] ss:$0 sm:$0xff] }
0x123a   : > { %4720 = vmatpush3.bf16.msra.mxu1 %v4719_v37 }
0x123b   : > { %4721 = vmatprep.subr.bf16.mxu1 %v5023_v0 }
0x123e   : > { %4723 = vmatpush3.bf16.msra.mxu1 %v4722_v40 }
0x1309   : > { %v3862_v25 = vpop.f32.mrb[20].mxu0 }
0x130a   : > { %v3863_v26 = vadd.f32 %v4338_v3, %v3862_v25  ;;  %v4633_v27 = vpop.f32.mrb[21].mxu0 }
0x130c   : > { %v3866_v28 = vadd.f32 %v3863_v26, %v5565_v61  ;;  %v4347_v61 = vld [vmem:[%s5812_s11 + $0x40] sm:$0xff] }
0x130d   : > { %v4725_v43 = vpack.c.bf16 %v4348_v41, %v4347_v61 }
0x130e   : > { %v3871_v29 = vsel %vm697_vm1, %v3866_v28, 0.0 }
0x130f   : > { %3872 = vadd.xlane.f32.xlu1 %v3871_v29  ;;  %4726 = vmatpush3.bf16.msra.mxu0 %v4725_v43 }
0x1310   : > { %4727 = vmatprep.subr.bf16.mxu0 %v5023_v0 }
0x1313   : > { %4729 = vmatpush3.bf16.msra.mxu0 %v4728_v45 }
0x1314   : > { %4730 = vmatprep.subr.bf16.mxu0 %v5023_v0 }
0x1317   : > { %4732 = vmatpush3.bf16.msra.mxu0 %v4731_v35 }
0x1318   : > { %4733 = vmatprep.subr.bf16.mxu0 %v5023_v0  ;;  %v4353_v0 = vld [vmem:[%s5812_s11 + $0x70] sm:$0xff] }
0x1319   : > { %v4734_v59 = vpack.c.bf16 %v4354_v57, %v4353_v0 }
0x131b   : > { %4735 = vmatpush3.bf16.msra.mxu0 %v4734_v59 }
0x139c   : > { %v3873_v30 = vpop.xlane.xlu1 %3872 }
0x139d   : > { %v3874_v31 = vmul.f32 0.03125, %v3873_v30 }
0x139f   : > { %v3875_v32 = vsub.f32 %v3866_v28, %v3874_v31 }
0x13a1   : > { %v3876_v33 = vmul.f32 %v3875_v32, %v3875_v32 }
0x13a3   : > { %v3877_v34 = vsel %vm697_vm1, %v3876_v33, 0.0  ;;  %v4362_v33 = vld [vmem:[%s5895_s0] ss:$0 sm:$0xff]  ;;  %s4948_s0 = scalar_lea.vmem %s4947_s23, 256 }
0x13a4   : > { %3878 = vadd.xlane.f32.xlu0 %v3877_v34  ;;  %p4950_p5 = scmp.lt.s32.totalorder %s4948_s0, %s4942_s10 }
0x13a6   : > { %p4951_p1 = por %p4950_p5, %p4949_p2 }
0x13a8   : > { %p4952_p6 = pnand %p4951_p1, %p4945_p9 }
0x1431   : > { %v3879_v48 = vpop.xlane.xlu0 %3878 }
0x1432   : > { %v3880_v49 = vmul.f32 0.03125, %v3879_v48 }
0x1434   : > { %v3881_v50 = vadd.f32 1e-05, %v3880_v49 }
0x1436   : > { %4848 = vrsqrt.f32 %v3881_v50 }
0x1440   : > { %v4849_v51 = vpop.eup %4848 }
0x1441   : > { %v3883_v53 = vmul.f32 %v4849_v51, %v3875_v32 }
0x1443   : > { %v3890_v55 = vmul.f32 %v4342_v52, %v3883_v53 }
0x1445   : > { %v3897_v56 = vadd.f32 %v4343_v54, %v3890_v55 }
0x1447   : > { %4643 = vmatmul.mubr.msk.f32.vlgmr.msra.gmra.mrb[26].mxu1 %vm697_vm1, %v3897_v56 }
0x151a   : > { %v3980_v62 = vpop.f32.mrb[26].mxu1 }
0x151b   : > { %v3981_v63 = vadd.f32 %v4345_v60, %v3980_v62  ;;  %v4644_v2 = vpop.f32.mrb[27].mxu1 }
0x151d   : > { %v3984_v4 = vmax.f32 %v3981_v63, 0.0 }
0x151f   : > { %4662 = vmatmul.mubr.msk.f32.vlgmr.msra.gmra.mrb[22].mxu0 %vm2288_vm5, %v3984_v4 }
0x15f2   : > { %v4071_v9 = vpop.f32.mrb[22].mxu0 }
0x15f3   : > { %v4072_v5 = vadd.f32 %v4356_v8, %v4071_v9  ;;  %v4663_v6 = vpop.f32.mrb[23].mxu0 }
0x15f5   : > { %v4075_v7 = vadd.f32 %v4072_v5, %v3897_v56 }
0x15f7   : > { %v4080_v10 = vsel %vm697_vm1, %v4075_v7, 0.0 }
0x15f8   : > { %4081 = vadd.xlane.f32.xlu1 %v4080_v10 }
0x1685   : > { %v4082_v11 = vpop.xlane.xlu1 %4081 }
0x1686   : > { %v4083_v12 = vmul.f32 0.03125, %v4082_v11 }
0x1688   : > { %v4084_v13 = vsub.f32 %v4075_v7, %v4083_v12 }
0x168a   : > { %v4085_v14 = vmul.f32 %v4084_v13, %v4084_v13 }
0x168c   : > { %v4086_v15 = vsel %vm697_vm1, %v4085_v14, 0.0 }
0x168d   : > { %4087 = vadd.xlane.f32.xlu0 %v4086_v15 }
0x171a   : > { %v4088_v16 = vpop.xlane.xlu0 %4087 }
0x171b   : > { %v4089_v17 = vmul.f32 0.03125, %v4088_v16 }
0x171d   : > { %v4090_v18 = vadd.f32 1e-05, %v4089_v17 }
0x171f   : > { %4850 = vrsqrt.f32 %v4090_v18 }
0x1729   : > { %v4851_v58 = vpop.eup %4850 }
0x172a   : > { %v4092_v20 = vmul.f32 %v4851_v58, %v4084_v13 }
0x172c   : > { %v4099_v22 = vmul.f32 %v4360_v19, %v4092_v20 }
0x172e   : > { %v4106_v23 = vadd.f32 %v4361_v21, %v4099_v22 }
0x1730   : > { %v4109_v24 = vsel %vm697_vm1, %v4106_v23, 0.0 }
0x1731   : > { %4110 = vadd.xlane.f32.xlu1 %v4109_v24 }
0x17be   : > { %v4111_v3 = vpop.xlane.xlu1 %4110 }
0x17bf   : > { %v4112_v25 = vmul.f32 0.03125, %v4111_v3 }
0x17c1   : > { %v4113_v26 = vsub.f32 %v4106_v23, %v4112_v25 }
0x17c3   : > { %v4114_v27 = vmul.f32 %v4113_v26, %v4113_v26 }
0x17c5   : > { %v4115_v28 = vsel %vm697_vm1, %v4114_v27, 0.0 }
0x17c6   : > { %4116 = vadd.xlane.f32.xlu0 %v4115_v28 }
0x1853   : > { %v4117_v29 = vpop.xlane.xlu0 %4116 }
0x1854   : > { %v4118_v30 = vmul.f32 0.03125, %v4117_v29 }
0x1856   : > { %v4119_v31 = vadd.f32 1e-05, %v4118_v30 }
0x1858   : > { %4852 = vrsqrt.f32 %v4119_v31 }
0x1862   : > { %v4853_v32 = vpop.eup %4852 }
0x1863   : > { %v4121_v34 = vmul.f32 %v4853_v32, %v4113_v26 }
0x1865   : > { %v4128_v36 = vmul.f32 %v4362_v33, %v4121_v34 }
0x1867   : > { %v4135_v37 = vadd.f32 %v4363_v1, %v4128_v36 }
0x1869   : > { %4136 = vst.msk [vmem:[%s679_s22] sm:$0xff] %vm697_vm1, %v4135_v37 }
0x186a   : > { %4955 = shalt.err (!%p4952_p6)
}
0x186b   : > { %s4956_s4 = scalar_lea.hbm %s5756_s6, 128  ;;  %s4960_s19 = scalar_lea.hbm %s5897_s5, 256 }
0x186c   : > { %p4957_p8 = scmp.ne.s32.totalorder %s5756_s6, %s4956_s4  ;;  %p4961_p11 = scmp.lt.u32.totalorder %s5756_s6, %s5897_s5 }
0x186d   : > { %p4962_p0 = scmp.lt.u32.totalorder %s4960_s19, %s4956_s4  ;;  %p4964_p13 = scmp.lt.u32.totalorder %s4956_s4, %s5756_s6 }
0x186e   : > { %p4958_p4 = pnand %p4957_p8, %p5898_p3 }
0x186f   : > { %p4963_p10 = por %p4962_p0, %p4961_p11 }
0x1870   : > { %p4959_p12 = pneg %p4958_p4 }
0x1871   : > { %p4965_p7 = por %p4964_p13, %p4963_p10 }
0x1873   : > { %p4966_p9 = pnand %p4965_p7, %p4959_p12 }
0x1875   : > { %4969 = shalt.err (!%p4966_p9)
}
0x1876   : > { %4744 = dma.vmem_to_hbm [thread:$0]  (%p5898_p3), %s5758_s24, 128, %s5756_s6, %s4138_s20  }
0x1877 PF: > { %s5899_s22 = sld [smem:[#allocation13_spill]]  ;;  %s5900_s2 = sld [smem:[#allocation15_spill]] }
0x1878   : > { %p5902_p5 = scmp.ge.s32.totalorder %s5016_s21, 2 }
0x187d   : > { %s4163_s10 = sand.u32 1, %s5899_s22   ;;  %p5901_p2 = scmp.ne.s32.totalorder %s5900_s2, 0 }
0x187e   : > { %s4164_s1 = scalar_lea.sflag [#allocation4], %s4163_s10 }
0x187f   : > { %p4758_p1 = pnand %p5902_p5, %p5901_p2 }
0x1881   : > { %4999 = dma.done.wait (!%p4758_p1), %s4164_s1, 128  }
0x1882   : > { %5001 = vsyncadd (!%p4758_p1), %s4164_s1, 4294967168  ;;  %s5903_s21 = sld [smem:[#allocation16_spill]]  ;;  %s5904_s23 = sld [smem:[#allocation14_spill]] }
0x1883   : > { %s5905_s20 = sld [smem:[#allocation17_spill]]  ;;  %s5906_s0 = smov %s5008_s30 }
0x1888   : > { %p35_p6 = scmp.ge.s32.totalorder %s5903_s21, 4   ;;  %s5907_s30 = smov %s5904_s23 }
0x188a   :  { %37 = sbr.rel (!%p35_p6) target bundleno = 23 (0x17), region = 175 }
0x1891   :  { %4169 = vsyncpa [#allocation3], 1 }
0x1892   :  { %4171 = vsyncpa [#allocation3 + $0x1], 1 }
0x1893   :  { %4172 = vsyncpa [#allocation6], 1 }
0x1894   :  { %4174 = vsyncpa [#allocation6 + $0x1], 1 }
0x1895   :  { %4175 = vsyncpa [#allocation4], 1 }
0x1896   :  { %4177 = vsyncpa [#allocation4 + $0x1], 1 }

</bundles_post_ra>
